<compile_context>
chip_gen: v6e
topology: v6e:2x2x1
jax: 0.10.0
libtpu: 0.0.40
codegen_flags: <defaults>
</compile_context>

<pallas_src>
import math

import jax
import jax.numpy as jnp
from jax import lax
from jax.experimental import pallas as pl
from jax.experimental.pallas import tpu as pltpu


# ----------------------------- model config (small) -------------------------
B = 2            # batch
S = 8            # seq_len
BS = B * S       # flattened batch*seq rows
DIN = 4          # input_dim
D = 32           # d_model
H = 4            # n_heads
DK = D // H      # d_k
L = 2            # n_layers
F = 64           # d_ff
EPS = 1e-5
SCALE = math.sqrt(DK)
INV_SCALE = 1.0 / SCALE
INV_SQRT2 = 1.0 / math.sqrt(2.0)
OUTP = 128       # lane-padded output width (multiple of 128, >= DIN)
QKVP = 128       # lane-padded packed QKV width (>= 3*D)

# --------------------- packed "consts" buffer row layout ---------------------
ROW_MASK = 0                      # [BS, BS]  additive causal/batch mask
ROW_EMB = ROW_MASK + BS           # [BS, D]   tiled positional enc + emb bias
ROW_WEMB = ROW_EMB + BS           # [DIN, D]  input embedding weight
ROW_LAYER = ROW_WEMB + DIN        # per-layer block of LROWS rows
R_LN1W, R_LN1B, R_WOB, R_LN2W, R_LN2B, R_B1, R_B2 = range(7)
LROWS = 7
ROW_LNF = ROW_LAYER + L * LROWS   # [2, D]    final LN weight / bias
ROW_BOUT = ROW_LNF + 2            # [1, OUTP] padded output-projection bias
NROWS_RAW = ROW_BOUT + 1
NROWS = -(-NROWS_RAW // 8) * 8    # sublane-pad


# ------------------------------- Pallas kernel ------------------------------
def _layernorm(h, w, b):
    mu = jnp.mean(h, axis=-1, keepdims=True)
    ms = jnp.mean(h * h, axis=-1, keepdims=True)     # independent of mu
    var = ms - mu * mu
    return (h - mu) * lax.rsqrt(var + EPS) * w + b


def tracegpt_kernel(x_ref, c_ref, wqkv_ref, wo_ref, w1_ref, w2_ref, wout_ref,
                    out_ref):
    x = x_ref[...]                                            # [BS, DIN]
    mask = c_ref[ROW_MASK:ROW_MASK + BS, :BS]                 # [BS, BS]
    emb_add = c_ref[ROW_EMB:ROW_EMB + BS, :D]                 # pe + b_emb
    w_emb = c_ref[ROW_WEMB:ROW_WEMB + DIN, :D]                # [DIN, D]

    # input embedding + positional encoding (dropout = identity at inference)
    h = jnp.dot(x, w_emb, preferred_element_type=jnp.float32) + emb_add

    for l in range(L):                                        # static layer loop
        base = ROW_LAYER + l * LROWS
        ln1w = c_ref[base + R_LN1W:base + R_LN1W + 1, :D]
        ln1b = c_ref[base + R_LN1B:base + R_LN1B + 1, :D]
        wob = c_ref[base + R_WOB:base + R_WOB + 1, :D]
        ln2w = c_ref[base + R_LN2W:base + R_LN2W + 1, :D]
        ln2b = c_ref[base + R_LN2B:base + R_LN2B + 1, :D]
        b1 = c_ref[base + R_B1:base + R_B1 + 1, :F]
        b2 = c_ref[base + R_B2:base + R_B2 + 1, :D]

        # ---- pre-norm multi-head self-attention ----
        hn = _layernorm(h, ln1w, ln1b)
        # single wide QKV projection (Q columns pre-scaled by 1/sqrt(d_k))
        qkv = jnp.dot(hn, wqkv_ref[l],
                      preferred_element_type=jnp.float32)     # [BS, QKVP]
        ctx_heads = []
        for hh in range(H):                                   # static head loop
            q = qkv[:, hh * DK:(hh + 1) * DK]                 # [BS, DK]
            k = qkv[:, D + hh * DK:D + (hh + 1) * DK]
            v = qkv[:, 2 * D + hh * DK:2 * D + (hh + 1) * DK]
            s = jnp.dot(q, k.T, preferred_element_type=jnp.float32) + mask
            s = s - jnp.max(s, axis=-1, keepdims=True)        # keep exact softmax
            p = jnp.exp(s)
            p = p * pl.reciprocal(jnp.sum(p, axis=-1, keepdims=True),
                                  approx=True)
            ctx_heads.append(jnp.dot(p, v,
                                     preferred_element_type=jnp.float32))
        ctx = jnp.concatenate(ctx_heads, axis=-1)             # [BS, D] head-major
        # fused head-reduction + output projection: one [BS,D]x[D,D] dot
        h = h + jnp.dot(ctx, wo_ref[l],
                        preferred_element_type=jnp.float32) + wob

        # ---- pre-norm feed-forward (exact GELU, like nn.GELU()) ----
        hn = _layernorm(h, ln2w, ln2b)
        a = jnp.dot(hn, w1_ref[l], preferred_element_type=jnp.float32) + b1
        g = 0.5 * a * (1.0 + lax.erf(a * INV_SQRT2))
        h = h + jnp.dot(g, w2_ref[l], preferred_element_type=jnp.float32) + b2

    # final norm + lane-padded output projection (unmasked store)
    hn = _layernorm(h,
                    c_ref[ROW_LNF:ROW_LNF + 1, :D],
                    c_ref[ROW_LNF + 1:ROW_LNF + 2, :D])
    out_ref[...] = (jnp.dot(hn, wout_ref[...],
                            preferred_element_type=jnp.float32)
                    + c_ref[ROW_BOUT:ROW_BOUT + 1, :])


# ---------------------- one-time parameter packing ---------------------------
def prepare_params(p):
    """Hoisted out of the per-call path: pack / pad / fold everything once."""
    consts = jnp.zeros((NROWS, 128), jnp.float32)

    # additive mask: causal within each sequence, -1e9 across sequences
    idx = jnp.arange(BS)
    same_seq = (idx[:, None] // S) == (idx[None, :] // S)
    causal = (idx[:, None] % S) >= (idx[None, :] % S)
    mask = jnp.where(same_seq & causal, 0.0, -1e9).astype(jnp.float32)
    consts = consts.at[ROW_MASK:ROW_MASK + BS, :BS].set(mask)

    emb_add = jnp.tile(p["pe"], (B, 1)) + p["b_emb"]          # [BS, D]
    consts = consts.at[ROW_EMB:ROW_EMB + BS, :D].set(emb_add)
    consts = consts.at[ROW_WEMB:ROW_WEMB + DIN, :D].set(p["w_emb"])

    for l in range(L):
        base = ROW_LAYER + l * LROWS
        consts = consts.at[base + R_LN1W, :D].set(p["ln1w"][l, 0])
        consts = consts.at[base + R_LN1B, :D].set(p["ln1b"][l, 0])
        consts = consts.at[base + R_WOB, :D].set(p["wob"][l, 0])
        consts = consts.at[base + R_LN2W, :D].set(p["ln2w"][l, 0])
        consts = consts.at[base + R_LN2B, :D].set(p["ln2b"][l, 0])
        consts = consts.at[base + R_B1, :F].set(p["b1"][l, 0])
        consts = consts.at[base + R_B2, :D].set(p["b2"][l, 0])

    consts = consts.at[ROW_LNF, :D].set(p["lnfw"][0])
    consts = consts.at[ROW_LNF + 1, :D].set(p["lnfb"][0])
    consts = consts.at[ROW_BOUT, :DIN].set(p["bout"][0])

    # packed QKV weight [L, D, QKVP]: [Wq/sqrt(dk) | Wk | Wv], lane-padded
    wqkv = jnp.concatenate(
        [p["wq"] * INV_SCALE, p["wk"], p["wv"]], axis=-1)     # [L, D, 3D]
    wqkv = jnp.pad(wqkv, ((0, 0), (0, 0), (0, QKVP - 3 * D)))

    # lane-padded output projection weight
    wout = jnp.zeros((D, OUTP), jnp.float32).at[:, :DIN].set(p["wout"])

    return dict(consts=consts, wqkv=wqkv, wo=p["wo"],
                w1=p["w1"], w2=p["w2"], wout=wout)


# ------------------------------- wrapper -------------------------------------
@jax.jit
def tracegpt_forward(x, packed):
    x_flat = x.reshape(BS, DIN)                               # fold batch into rows
    vmem = pl.BlockSpec(memory_space=pltpu.MemorySpace.VMEM)
    out_pad = pl.pallas_call(
        tracegpt_kernel,
        out_shape=jax.ShapeDtypeStruct((BS, OUTP), jnp.float32),
        in_specs=[vmem] * 7,
        out_specs=vmem,
    )(x_flat, packed["consts"], packed["wqkv"], packed["wo"],
      packed["w1"], packed["w2"], packed["wout"])
    return out_pad[:, :DIN].reshape(B, S, DIN)


# ------------------------- parameter initialization --------------------------
def init_params(key):
    std = 0.02
    keys = jax.random.split(key, 16)

    def nrm(k, shape):
        return (std * jax.random.normal(k, shape)).astype(jnp.float32)

    # sinusoidal positional encoding [S, D]
    position = jnp.arange(S, dtype=jnp.float32)[:, None]
    div_term = jnp.exp(jnp.arange(0, D, 2, dtype=jnp.float32) *
                       (-math.log(10000.0) / D))
    pe = jnp.zeros((S, D), dtype=jnp.float32)
    pe = pe.at[:, 0::2].set(jnp.sin(position * div_term))
    pe = pe.at[:, 1::2].set(jnp.cos(position * div_term))

    params = dict(
        pe=pe,
        w_emb=nrm(keys[0], (DIN, D)), b_emb=jnp.zeros((1, D), jnp.float32),
        ln1w=jnp.ones((L, 1, D), jnp.float32), ln1b=jnp.zeros((L, 1, D), jnp.float32),
        wq=nrm(keys[1], (L, D, D)), wk=nrm(keys[2], (L, D, D)),
        wv=nrm(keys[3], (L, D, D)), wo=nrm(keys[4], (L, D, D)),
        wob=jnp.zeros((L, 1, D), jnp.float32),
        ln2w=jnp.ones((L, 1, D), jnp.float32), ln2b=jnp.zeros((L, 1, D), jnp.float32),
        w1=nrm(keys[5], (L, D, F)), b1=jnp.zeros((L, 1, F), jnp.float32),
        w2=nrm(keys[6], (L, F, D)), b2=jnp.zeros((L, 1, D), jnp.float32),
        lnfw=jnp.ones((1, D), jnp.float32), lnfb=jnp.zeros((1, D), jnp.float32),
        wout=nrm(keys[7], (D, DIN)), bout=jnp.zeros((1, DIN), jnp.float32),
    )
    return params


# --------------------------- pure-JAX reference -------------------------------
def ref_forward(x, p):
    def ln(h, w, b):
        mu = jnp.mean(h, axis=-1, keepdims=True)
        var = jnp.mean((h - mu) ** 2, axis=-1, keepdims=True)
        return (h - mu) / jnp.sqrt(var + EPS) * w + b

    h = x @ p["w_emb"] + p["b_emb"]
    h = h + p["pe"][None]
    causal = jnp.tril(jnp.ones((S, S), bool))
    for l in range(L):
        hn = ln(h, p["ln1w"][l], p["ln1b"][l])
        q = hn @ p["wq"][l]
        k = hn @ p["wk"][l]
        v = hn @ p["wv"][l]
        q = q.reshape(B, S, H, DK).transpose(0, 2, 1, 3)
        k = k.reshape(B, S, H, DK).transpose(0, 2, 1, 3)
        v = v.reshape(B, S, H, DK).transpose(0, 2, 1, 3)
        s = jnp.einsum("bhqd,bhkd->bhqk", q, k) / SCALE
        s = jnp.where(causal[None, None], s, -1e9)
        a = jax.nn.softmax(s, axis=-1)
        ctx = jnp.einsum("bhqk,bhkd->bhqd", a, v).transpose(0, 2, 1, 3).reshape(B, S, D)
        h = h + (ctx @ p["wo"][l] + p["wob"][l])
        hn = ln(h, p["ln2w"][l], p["ln2b"][l])
        g = jax.nn.gelu(hn @ p["w1"][l] + p["b1"][l], approximate=False)
        h = h + (g @ p["w2"][l] + p["b2"][l])
    hn = ln(h, p["lnfw"], p["lnfb"])
    return hn @ p["wout"] + p["bout"]


# ------------------------------------ main ------------------------------------
if __name__ == "__main__":
    key = jax.random.PRNGKey(0)
    k_x, k_p = jax.random.split(key)
    x = jax.random.normal(k_x, (B, S, DIN), dtype=jnp.float32)
    params = init_params(k_p)
    packed = prepare_params(params)          # one-time packing, outside hot path

    out = jax.block_until_ready(tracegpt_forward(x, packed))
    ref = jax.block_until_ready(ref_forward(x, params))

    assert out.shape == (B, S, DIN)
    max_err = float(jnp.max(jnp.abs(out - ref)))
    assert jnp.allclose(out, ref, atol=2e-3, rtol=2e-3), (
        "mismatch vs reference: max abs diff = %g" % max_err)

    print("KERNEL_OK")
</pallas_src>

<mosaic_0001>
module attributes {stable_mosaic.version = 11 : i64} {
  func.func @tracegpt_kernel(%arg0: memref<16x4xf32, #tpu.memory_space<vmem>>, %arg1: memref<56x128xf32, #tpu.memory_space<vmem>>, %arg2: memref<2x32x128xf32, #tpu.memory_space<vmem>>, %arg3: memref<2x32x32xf32, #tpu.memory_space<vmem>>, %arg4: memref<2x32x64xf32, #tpu.memory_space<vmem>>, %arg5: memref<2x64x32xf32, #tpu.memory_space<vmem>>, %arg6: memref<32x128xf32, #tpu.memory_space<vmem>>, %arg7: memref<16x128xf32, #tpu.memory_space<vmem>>) attributes {dimension_semantics = [], scalar_prefetch = 0 : i64, scratch_operands = 0 : i64, tpu.core_type = #tpu.core_type<tc>} {
    %c0 = arith.constant 0 : index
    %c0_0 = arith.constant 0 : index
    %0 = vector.load %arg0[%c0, %c0_0] : memref<16x4xf32, #tpu.memory_space<vmem>>, vector<16x4xf32>
    %c0_1 = arith.constant 0 : index
    %c0_2 = arith.constant 0 : index
    %1 = vector.load %arg1[%c0_1, %c0_2] : memref<56x128xf32, #tpu.memory_space<vmem>>, vector<16x16xf32>
    %c16 = arith.constant 16 : index
    %c0_3 = arith.constant 0 : index
    %2 = vector.load %arg1[%c16, %c0_3] : memref<56x128xf32, #tpu.memory_space<vmem>>, vector<16x32xf32>
    %c32 = arith.constant 32 : index
    %c0_4 = arith.constant 0 : index
    %3 = vector.load %arg1[%c32, %c0_4] : memref<56x128xf32, #tpu.memory_space<vmem>>, vector<4x32xf32>
    %cst = arith.constant dense<0.000000e+00> : vector<16x32xf32>
    %4 = tpu.matmul %0, %3, %cst {dimension_numbers = #tpu.dot_dimension_numbers<[1], [0], [0], [1], [0, 0, 1, 1], [], []>} : vector<16x4xf32>, vector<4x32xf32>, vector<16x32xf32> -> vector<16x32xf32>
    %5 = arith.addf %4, %2 : vector<16x32xf32>
    %c36 = arith.constant 36 : index
    %c0_5 = arith.constant 0 : index
    %6 = vector.load %arg1[%c36, %c0_5] : memref<56x128xf32, #tpu.memory_space<vmem>>, vector<1x32xf32>
    %c37 = arith.constant 37 : index
    %c0_6 = arith.constant 0 : index
    %7 = vector.load %arg1[%c37, %c0_6] : memref<56x128xf32, #tpu.memory_space<vmem>>, vector<1x32xf32>
    %c38 = arith.constant 38 : index
    %c0_7 = arith.constant 0 : index
    %8 = vector.load %arg1[%c38, %c0_7] : memref<56x128xf32, #tpu.memory_space<vmem>>, vector<1x32xf32>
    %c39 = arith.constant 39 : index
    %c0_8 = arith.constant 0 : index
    %9 = vector.load %arg1[%c39, %c0_8] : memref<56x128xf32, #tpu.memory_space<vmem>>, vector<1x32xf32>
    %c40 = arith.constant 40 : index
    %c0_9 = arith.constant 0 : index
    %10 = vector.load %arg1[%c40, %c0_9] : memref<56x128xf32, #tpu.memory_space<vmem>>, vector<1x32xf32>
    %c41 = arith.constant 41 : index
    %c0_10 = arith.constant 0 : index
    %11 = vector.load %arg1[%c41, %c0_10] : memref<56x128xf32, #tpu.memory_space<vmem>>, vector<1x64xf32>
    %c42 = arith.constant 42 : index
    %c0_11 = arith.constant 0 : index
    %12 = vector.load %arg1[%c42, %c0_11] : memref<56x128xf32, #tpu.memory_space<vmem>>, vector<1x32xf32>
    %cst_12 = arith.constant dense<0.000000e+00> : vector<16xf32>
    %13 = vector.multi_reduction <add>, %5, %cst_12 [1] : vector<16x32xf32> to vector<16xf32>
    %14 = vector.shape_cast %13 : vector<16xf32> to vector<16x1xf32>
    %cst_13 = arith.constant 3.200000e+01 : f32
    %15 = vector.broadcast %cst_13 : f32 to vector<16x1xf32>
    %16 = arith.divf %14, %15 : vector<16x1xf32>
    %17 = arith.mulf %5, %5 : vector<16x32xf32>
    %cst_14 = arith.constant dense<0.000000e+00> : vector<16xf32>
    %18 = vector.multi_reduction <add>, %17, %cst_14 [1] : vector<16x32xf32> to vector<16xf32>
    %19 = vector.shape_cast %18 : vector<16xf32> to vector<16x1xf32>
    %cst_15 = arith.constant 3.200000e+01 : f32
    %20 = vector.broadcast %cst_15 : f32 to vector<16x1xf32>
    %21 = arith.divf %19, %20 : vector<16x1xf32>
    %22 = arith.mulf %16, %16 : vector<16x1xf32>
    %23 = arith.subf %21, %22 : vector<16x1xf32>
    %24 = vector.broadcast %16 : vector<16x1xf32> to vector<16x32xf32>
    %25 = arith.subf %5, %24 : vector<16x32xf32>
    %cst_16 = arith.constant 9.99999974E-6 : f32
    %26 = vector.broadcast %cst_16 : f32 to vector<16x1xf32>
    %27 = arith.addf %23, %26 : vector<16x1xf32>
    %28 = math.rsqrt %27 : vector<16x1xf32>
    %29 = vector.broadcast %28 : vector<16x1xf32> to vector<16x32xf32>
    %30 = arith.mulf %25, %29 : vector<16x32xf32>
    %31 = vector.broadcast %6 : vector<1x32xf32> to vector<16x32xf32>
    %32 = arith.mulf %30, %31 : vector<16x32xf32>
    %33 = vector.broadcast %7 : vector<1x32xf32> to vector<16x32xf32>
    %34 = arith.addf %32, %33 : vector<16x32xf32>
    %c0_17 = arith.constant 0 : index
    %c0_18 = arith.constant 0 : index
    %c0_19 = arith.constant 0 : index
    %35 = vector.load %arg2[%c0_17, %c0_18, %c0_19] : memref<2x32x128xf32, #tpu.memory_space<vmem>>, vector<1x32x128xf32>
    %36 = vector.shape_cast %35 : vector<1x32x128xf32> to vector<32x128xf32>
    %cst_20 = arith.constant dense<0.000000e+00> : vector<16x128xf32>
    %37 = tpu.matmul %34, %36, %cst_20 {dimension_numbers = #tpu.dot_dimension_numbers<[1], [0], [0], [1], [0, 0, 1, 1], [], []>} : vector<16x32xf32>, vector<32x128xf32>, vector<16x128xf32> -> vector<16x128xf32>
    %38 = vector.extract_strided_slice %37 {offsets = [0, 0], sizes = [16, 8], strides = [1, 1]} : vector<16x128xf32> to vector<16x8xf32>
    %39 = vector.extract_strided_slice %37 {offsets = [0, 32], sizes = [16, 8], strides = [1, 1]} : vector<16x128xf32> to vector<16x8xf32>
    %40 = vector.extract_strided_slice %37 {offsets = [0, 64], sizes = [16, 8], strides = [1, 1]} : vector<16x128xf32> to vector<16x8xf32>
    %41 = tpu.transpose %39, [1, 0] : vector<16x8xf32> -> vector<8x16xf32>
    %cst_21 = arith.constant dense<0.000000e+00> : vector<16x16xf32>
    %42 = tpu.matmul %38, %41, %cst_21 {dimension_numbers = #tpu.dot_dimension_numbers<[1], [0], [0], [1], [0, 0, 1, 1], [], []>} : vector<16x8xf32>, vector<8x16xf32>, vector<16x16xf32> -> vector<16x16xf32>
    %43 = arith.addf %42, %1 : vector<16x16xf32>
    %cst_22 = arith.constant dense<0xFF800000> : vector<16xf32>
    %44 = vector.multi_reduction <maximumf>, %43, %cst_22 [1] : vector<16x16xf32> to vector<16xf32>
    %45 = vector.shape_cast %44 : vector<16xf32> to vector<16x1xf32>
    %46 = vector.broadcast %45 : vector<16x1xf32> to vector<16x16xf32>
    %47 = arith.subf %43, %46 : vector<16x16xf32>
    %48 = math.exp %47 : vector<16x16xf32>
    %cst_23 = arith.constant dense<0.000000e+00> : vector<16xf32>
    %49 = vector.multi_reduction <add>, %48, %cst_23 [1] : vector<16x16xf32> to vector<16xf32>
    %50 = vector.shape_cast %49 : vector<16xf32> to vector<16x1xf32>
    %51 = tpu.reciprocal %50 {approx = true} : vector<16x1xf32> -> vector<16x1xf32>
    %52 = vector.broadcast %51 : vector<16x1xf32> to vector<16x16xf32>
    %53 = arith.mulf %48, %52 : vector<16x16xf32>
    %cst_24 = arith.constant dense<0.000000e+00> : vector<16x8xf32>
    %54 = tpu.matmul %53, %40, %cst_24 {dimension_numbers = #tpu.dot_dimension_numbers<[1], [0], [0], [1], [0, 0, 1, 1], [], []>} : vector<16x16xf32>, vector<16x8xf32>, vector<16x8xf32> -> vector<16x8xf32>
    %55 = vector.extract_strided_slice %37 {offsets = [0, 8], sizes = [16, 8], strides = [1, 1]} : vector<16x128xf32> to vector<16x8xf32>
    %56 = vector.extract_strided_slice %37 {offsets = [0, 40], sizes = [16, 8], strides = [1, 1]} : vector<16x128xf32> to vector<16x8xf32>
    %57 = vector.extract_strided_slice %37 {offsets = [0, 72], sizes = [16, 8], strides = [1, 1]} : vector<16x128xf32> to vector<16x8xf32>
    %58 = tpu.transpose %56, [1, 0] : vector<16x8xf32> -> vector<8x16xf32>
    %cst_25 = arith.constant dense<0.000000e+00> : vector<16x16xf32>
    %59 = tpu.matmul %55, %58, %cst_25 {dimension_numbers = #tpu.dot_dimension_numbers<[1], [0], [0], [1], [0, 0, 1, 1], [], []>} : vector<16x8xf32>, vector<8x16xf32>, vector<16x16xf32> -> vector<16x16xf32>
    %60 = arith.addf %59, %1 : vector<16x16xf32>
    %cst_26 = arith.constant dense<0xFF800000> : vector<16xf32>
    %61 = vector.multi_reduction <maximumf>, %60, %cst_26 [1] : vector<16x16xf32> to vector<16xf32>
    %62 = vector.shape_cast %61 : vector<16xf32> to vector<16x1xf32>
    %63 = vector.broadcast %62 : vector<16x1xf32> to vector<16x16xf32>
    %64 = arith.subf %60, %63 : vector<16x16xf32>
    %65 = math.exp %64 : vector<16x16xf32>
    %cst_27 = arith.constant dense<0.000000e+00> : vector<16xf32>
    %66 = vector.multi_reduction <add>, %65, %cst_27 [1] : vector<16x16xf32> to vector<16xf32>
    %67 = vector.shape_cast %66 : vector<16xf32> to vector<16x1xf32>
    %68 = tpu.reciprocal %67 {approx = true} : vector<16x1xf32> -> vector<16x1xf32>
    %69 = vector.broadcast %68 : vector<16x1xf32> to vector<16x16xf32>
    %70 = arith.mulf %65, %69 : vector<16x16xf32>
    %cst_28 = arith.constant dense<0.000000e+00> : vector<16x8xf32>
    %71 = tpu.matmul %70, %57, %cst_28 {dimension_numbers = #tpu.dot_dimension_numbers<[1], [0], [0], [1], [0, 0, 1, 1], [], []>} : vector<16x16xf32>, vector<16x8xf32>, vector<16x8xf32> -> vector<16x8xf32>
    %72 = vector.extract_strided_slice %37 {offsets = [0, 16], sizes = [16, 8], strides = [1, 1]} : vector<16x128xf32> to vector<16x8xf32>
    %73 = vector.extract_strided_slice %37 {offsets = [0, 48], sizes = [16, 8], strides = [1, 1]} : vector<16x128xf32> to vector<16x8xf32>
    %74 = vector.extract_strided_slice %37 {offsets = [0, 80], sizes = [16, 8], strides = [1, 1]} : vector<16x128xf32> to vector<16x8xf32>
    %75 = tpu.transpose %73, [1, 0] : vector<16x8xf32> -> vector<8x16xf32>
    %cst_29 = arith.constant dense<0.000000e+00> : vector<16x16xf32>
    %76 = tpu.matmul %72, %75, %cst_29 {dimension_numbers = #tpu.dot_dimension_numbers<[1], [0], [0], [1], [0, 0, 1, 1], [], []>} : vector<16x8xf32>, vector<8x16xf32>, vector<16x16xf32> -> vector<16x16xf32>
    %77 = arith.addf %76, %1 : vector<16x16xf32>
    %cst_30 = arith.constant dense<0xFF800000> : vector<16xf32>
    %78 = vector.multi_reduction <maximumf>, %77, %cst_30 [1] : vector<16x16xf32> to vector<16xf32>
    %79 = vector.shape_cast %78 : vector<16xf32> to vector<16x1xf32>
    %80 = vector.broadcast %79 : vector<16x1xf32> to vector<16x16xf32>
    %81 = arith.subf %77, %80 : vector<16x16xf32>
    %82 = math.exp %81 : vector<16x16xf32>
    %cst_31 = arith.constant dense<0.000000e+00> : vector<16xf32>
    %83 = vector.multi_reduction <add>, %82, %cst_31 [1] : vector<16x16xf32> to vector<16xf32>
    %84 = vector.shape_cast %83 : vector<16xf32> to vector<16x1xf32>
    %85 = tpu.reciprocal %84 {approx = true} : vector<16x1xf32> -> vector<16x1xf32>
    %86 = vector.broadcast %85 : vector<16x1xf32> to vector<16x16xf32>
    %87 = arith.mulf %82, %86 : vector<16x16xf32>
    %cst_32 = arith.constant dense<0.000000e+00> : vector<16x8xf32>
    %88 = tpu.matmul %87, %74, %cst_32 {dimension_numbers = #tpu.dot_dimension_numbers<[1], [0], [0], [1], [0, 0, 1, 1], [], []>} : vector<16x16xf32>, vector<16x8xf32>, vector<16x8xf32> -> vector<16x8xf32>
    %89 = vector.extract_strided_slice %37 {offsets = [0, 24], sizes = [16, 8], strides = [1, 1]} : vector<16x128xf32> to vector<16x8xf32>
    %90 = vector.extract_strided_slice %37 {offsets = [0, 56], sizes = [16, 8], strides = [1, 1]} : vector<16x128xf32> to vector<16x8xf32>
    %91 = vector.extract_strided_slice %37 {offsets = [0, 88], sizes = [16, 8], strides = [1, 1]} : vector<16x128xf32> to vector<16x8xf32>
    %92 = tpu.transpose %90, [1, 0] : vector<16x8xf32> -> vector<8x16xf32>
    %cst_33 = arith.constant dense<0.000000e+00> : vector<16x16xf32>
    %93 = tpu.matmul %89, %92, %cst_33 {dimension_numbers = #tpu.dot_dimension_numbers<[1], [0], [0], [1], [0, 0, 1, 1], [], []>} : vector<16x8xf32>, vector<8x16xf32>, vector<16x16xf32> -> vector<16x16xf32>
    %94 = arith.addf %93, %1 : vector<16x16xf32>
    %cst_34 = arith.constant dense<0xFF800000> : vector<16xf32>
    %95 = vector.multi_reduction <maximumf>, %94, %cst_34 [1] : vector<16x16xf32> to vector<16xf32>
    %96 = vector.shape_cast %95 : vector<16xf32> to vector<16x1xf32>
    %97 = vector.broadcast %96 : vector<16x1xf32> to vector<16x16xf32>
    %98 = arith.subf %94, %97 : vector<16x16xf32>
    %99 = math.exp %98 : vector<16x16xf32>
    %cst_35 = arith.constant dense<0.000000e+00> : vector<16xf32>
    %100 = vector.multi_reduction <add>, %99, %cst_35 [1] : vector<16x16xf32> to vector<16xf32>
    %101 = vector.shape_cast %100 : vector<16xf32> to vector<16x1xf32>
    %102 = tpu.reciprocal %101 {approx = true} : vector<16x1xf32> -> vector<16x1xf32>
    %103 = vector.broadcast %102 : vector<16x1xf32> to vector<16x16xf32>
    %104 = arith.mulf %99, %103 : vector<16x16xf32>
    %cst_36 = arith.constant dense<0.000000e+00> : vector<16x8xf32>
    %105 = tpu.matmul %104, %91, %cst_36 {dimension_numbers = #tpu.dot_dimension_numbers<[1], [0], [0], [1], [0, 0, 1, 1], [], []>} : vector<16x16xf32>, vector<16x8xf32>, vector<16x8xf32> -> vector<16x8xf32>
    %106 = tpu.concatenate %54, %71, %88, %105 in 1 : vector<16x8xf32>, vector<16x8xf32>, vector<16x8xf32>, vector<16x8xf32> -> vector<16x32xf32>
    %c0_37 = arith.constant 0 : index
    %c0_38 = arith.constant 0 : index
    %c0_39 = arith.constant 0 : index
    %107 = vector.load %arg3[%c0_37, %c0_38, %c0_39] : memref<2x32x32xf32, #tpu.memory_space<vmem>>, vector<1x32x32xf32>
    %108 = vector.shape_cast %107 : vector<1x32x32xf32> to vector<32x32xf32>
    %cst_40 = arith.constant dense<0.000000e+00> : vector<16x32xf32>
    %109 = tpu.matmul %106, %108, %cst_40 {dimension_numbers = #tpu.dot_dimension_numbers<[1], [0], [0], [1], [0, 0, 1, 1], [], []>} : vector<16x32xf32>, vector<32x32xf32>, vector<16x32xf32> -> vector<16x32xf32>
    %110 = arith.addf %5, %109 : vector<16x32xf32>
    %111 = vector.broadcast %8 : vector<1x32xf32> to vector<16x32xf32>
    %112 = arith.addf %110, %111 : vector<16x32xf32>
    %cst_41 = arith.constant dense<0.000000e+00> : vector<16xf32>
    %113 = vector.multi_reduction <add>, %112, %cst_41 [1] : vector<16x32xf32> to vector<16xf32>
    %114 = vector.shape_cast %113 : vector<16xf32> to vector<16x1xf32>
    %cst_42 = arith.constant 3.200000e+01 : f32
    %115 = vector.broadcast %cst_42 : f32 to vector<16x1xf32>
    %116 = arith.divf %114, %115 : vector<16x1xf32>
    %117 = arith.mulf %112, %112 : vector<16x32xf32>
    %cst_43 = arith.constant dense<0.000000e+00> : vector<16xf32>
    %118 = vector.multi_reduction <add>, %117, %cst_43 [1] : vector<16x32xf32> to vector<16xf32>
    %119 = vector.shape_cast %118 : vector<16xf32> to vector<16x1xf32>
    %cst_44 = arith.constant 3.200000e+01 : f32
    %120 = vector.broadcast %cst_44 : f32 to vector<16x1xf32>
    %121 = arith.divf %119, %120 : vector<16x1xf32>
    %122 = arith.mulf %116, %116 : vector<16x1xf32>
    %123 = arith.subf %121, %122 : vector<16x1xf32>
    %124 = vector.broadcast %116 : vector<16x1xf32> to vector<16x32xf32>
    %125 = arith.subf %112, %124 : vector<16x32xf32>
    %cst_45 = arith.constant 9.99999974E-6 : f32
    %126 = vector.broadcast %cst_45 : f32 to vector<16x1xf32>
    %127 = arith.addf %123, %126 : vector<16x1xf32>
    %128 = math.rsqrt %127 : vector<16x1xf32>
    %129 = vector.broadcast %128 : vector<16x1xf32> to vector<16x32xf32>
    %130 = arith.mulf %125, %129 : vector<16x32xf32>
    %131 = vector.broadcast %9 : vector<1x32xf32> to vector<16x32xf32>
    %132 = arith.mulf %130, %131 : vector<16x32xf32>
    %133 = vector.broadcast %10 : vector<1x32xf32> to vector<16x32xf32>
    %134 = arith.addf %132, %133 : vector<16x32xf32>
    %c0_46 = arith.constant 0 : index
    %c0_47 = arith.constant 0 : index
    %c0_48 = arith.constant 0 : index
    %135 = vector.load %arg4[%c0_46, %c0_47, %c0_48] : memref<2x32x64xf32, #tpu.memory_space<vmem>>, vector<1x32x64xf32>
    %136 = vector.shape_cast %135 : vector<1x32x64xf32> to vector<32x64xf32>
    %cst_49 = arith.constant dense<0.000000e+00> : vector<16x64xf32>
    %137 = tpu.matmul %134, %136, %cst_49 {dimension_numbers = #tpu.dot_dimension_numbers<[1], [0], [0], [1], [0, 0, 1, 1], [], []>} : vector<16x32xf32>, vector<32x64xf32>, vector<16x64xf32> -> vector<16x64xf32>
    %138 = vector.broadcast %11 : vector<1x64xf32> to vector<16x64xf32>
    %139 = arith.addf %137, %138 : vector<16x64xf32>
    %cst_50 = arith.constant 5.000000e-01 : f32
    %140 = vector.broadcast %cst_50 : f32 to vector<16x64xf32>
    %141 = arith.mulf %140, %139 : vector<16x64xf32>
    %cst_51 = arith.constant 0.707106769 : f32
    %142 = vector.broadcast %cst_51 : f32 to vector<16x64xf32>
    %143 = arith.mulf %139, %142 : vector<16x64xf32>
    %144 = math.erf %143 : vector<16x64xf32>
    %cst_52 = arith.constant 1.000000e+00 : f32
    %145 = vector.broadcast %cst_52 : f32 to vector<16x64xf32>
    %146 = arith.addf %145, %144 : vector<16x64xf32>
    %147 = arith.mulf %141, %146 : vector<16x64xf32>
    %c0_53 = arith.constant 0 : index
    %c0_54 = arith.constant 0 : index
    %c0_55 = arith.constant 0 : index
    %148 = vector.load %arg5[%c0_53, %c0_54, %c0_55] : memref<2x64x32xf32, #tpu.memory_space<vmem>>, vector<1x64x32xf32>
    %149 = vector.shape_cast %148 : vector<1x64x32xf32> to vector<64x32xf32>
    %cst_56 = arith.constant dense<0.000000e+00> : vector<16x32xf32>
    %150 = tpu.matmul %147, %149, %cst_56 {dimension_numbers = #tpu.dot_dimension_numbers<[1], [0], [0], [1], [0, 0, 1, 1], [], []>} : vector<16x64xf32>, vector<64x32xf32>, vector<16x32xf32> -> vector<16x32xf32>
    %151 = arith.addf %112, %150 : vector<16x32xf32>
    %152 = vector.broadcast %12 : vector<1x32xf32> to vector<16x32xf32>
    %153 = arith.addf %151, %152 : vector<16x32xf32>
    %c43 = arith.constant 43 : index
    %c0_57 = arith.constant 0 : index
    %154 = vector.load %arg1[%c43, %c0_57] : memref<56x128xf32, #tpu.memory_space<vmem>>, vector<1x32xf32>
    %c44 = arith.constant 44 : index
    %c0_58 = arith.constant 0 : index
    %155 = vector.load %arg1[%c44, %c0_58] : memref<56x128xf32, #tpu.memory_space<vmem>>, vector<1x32xf32>
    %c45 = arith.constant 45 : index
    %c0_59 = arith.constant 0 : index
    %156 = vector.load %arg1[%c45, %c0_59] : memref<56x128xf32, #tpu.memory_space<vmem>>, vector<1x32xf32>
    %c46 = arith.constant 46 : index
    %c0_60 = arith.constant 0 : index
    %157 = vector.load %arg1[%c46, %c0_60] : memref<56x128xf32, #tpu.memory_space<vmem>>, vector<1x32xf32>
    %c47 = arith.constant 47 : index
    %c0_61 = arith.constant 0 : index
    %158 = vector.load %arg1[%c47, %c0_61] : memref<56x128xf32, #tpu.memory_space<vmem>>, vector<1x32xf32>
    %c48 = arith.constant 48 : index
    %c0_62 = arith.constant 0 : index
    %159 = vector.load %arg1[%c48, %c0_62] : memref<56x128xf32, #tpu.memory_space<vmem>>, vector<1x64xf32>
    %c49 = arith.constant 49 : index
    %c0_63 = arith.constant 0 : index
    %160 = vector.load %arg1[%c49, %c0_63] : memref<56x128xf32, #tpu.memory_space<vmem>>, vector<1x32xf32>
    %cst_64 = arith.constant dense<0.000000e+00> : vector<16xf32>
    %161 = vector.multi_reduction <add>, %153, %cst_64 [1] : vector<16x32xf32> to vector<16xf32>
    %162 = vector.shape_cast %161 : vector<16xf32> to vector<16x1xf32>
    %cst_65 = arith.constant 3.200000e+01 : f32
    %163 = vector.broadcast %cst_65 : f32 to vector<16x1xf32>
    %164 = arith.divf %162, %163 : vector<16x1xf32>
    %165 = arith.mulf %153, %153 : vector<16x32xf32>
    %cst_66 = arith.constant dense<0.000000e+00> : vector<16xf32>
    %166 = vector.multi_reduction <add>, %165, %cst_66 [1] : vector<16x32xf32> to vector<16xf32>
    %167 = vector.shape_cast %166 : vector<16xf32> to vector<16x1xf32>
    %cst_67 = arith.constant 3.200000e+01 : f32
    %168 = vector.broadcast %cst_67 : f32 to vector<16x1xf32>
    %169 = arith.divf %167, %168 : vector<16x1xf32>
    %170 = arith.mulf %164, %164 : vector<16x1xf32>
    %171 = arith.subf %169, %170 : vector<16x1xf32>
    %172 = vector.broadcast %164 : vector<16x1xf32> to vector<16x32xf32>
    %173 = arith.subf %153, %172 : vector<16x32xf32>
    %cst_68 = arith.constant 9.99999974E-6 : f32
    %174 = vector.broadcast %cst_68 : f32 to vector<16x1xf32>
    %175 = arith.addf %171, %174 : vector<16x1xf32>
    %176 = math.rsqrt %175 : vector<16x1xf32>
    %177 = vector.broadcast %176 : vector<16x1xf32> to vector<16x32xf32>
    %178 = arith.mulf %173, %177 : vector<16x32xf32>
    %179 = vector.broadcast %154 : vector<1x32xf32> to vector<16x32xf32>
    %180 = arith.mulf %178, %179 : vector<16x32xf32>
    %181 = vector.broadcast %155 : vector<1x32xf32> to vector<16x32xf32>
    %182 = arith.addf %180, %181 : vector<16x32xf32>
    %c1 = arith.constant 1 : index
    %c0_69 = arith.constant 0 : index
    %c0_70 = arith.constant 0 : index
    %183 = vector.load %arg2[%c1, %c0_69, %c0_70] : memref<2x32x128xf32, #tpu.memory_space<vmem>>, vector<1x32x128xf32>
    %184 = vector.shape_cast %183 : vector<1x32x128xf32> to vector<32x128xf32>
    %cst_71 = arith.constant dense<0.000000e+00> : vector<16x128xf32>
    %185 = tpu.matmul %182, %184, %cst_71 {dimension_numbers = #tpu.dot_dimension_numbers<[1], [0], [0], [1], [0, 0, 1, 1], [], []>} : vector<16x32xf32>, vector<32x128xf32>, vector<16x128xf32> -> vector<16x128xf32>
    %186 = vector.extract_strided_slice %185 {offsets = [0, 0], sizes = [16, 8], strides = [1, 1]} : vector<16x128xf32> to vector<16x8xf32>
    %187 = vector.extract_strided_slice %185 {offsets = [0, 32], sizes = [16, 8], strides = [1, 1]} : vector<16x128xf32> to vector<16x8xf32>
    %188 = vector.extract_strided_slice %185 {offsets = [0, 64], sizes = [16, 8], strides = [1, 1]} : vector<16x128xf32> to vector<16x8xf32>
    %189 = tpu.transpose %187, [1, 0] : vector<16x8xf32> -> vector<8x16xf32>
    %cst_72 = arith.constant dense<0.000000e+00> : vector<16x16xf32>
    %190 = tpu.matmul %186, %189, %cst_72 {dimension_numbers = #tpu.dot_dimension_numbers<[1], [0], [0], [1], [0, 0, 1, 1], [], []>} : vector<16x8xf32>, vector<8x16xf32>, vector<16x16xf32> -> vector<16x16xf32>
    %191 = arith.addf %190, %1 : vector<16x16xf32>
    %cst_73 = arith.constant dense<0xFF800000> : vector<16xf32>
    %192 = vector.multi_reduction <maximumf>, %191, %cst_73 [1] : vector<16x16xf32> to vector<16xf32>
    %193 = vector.shape_cast %192 : vector<16xf32> to vector<16x1xf32>
    %194 = vector.broadcast %193 : vector<16x1xf32> to vector<16x16xf32>
    %195 = arith.subf %191, %194 : vector<16x16xf32>
    %196 = math.exp %195 : vector<16x16xf32>
    %cst_74 = arith.constant dense<0.000000e+00> : vector<16xf32>
    %197 = vector.multi_reduction <add>, %196, %cst_74 [1] : vector<16x16xf32> to vector<16xf32>
    %198 = vector.shape_cast %197 : vector<16xf32> to vector<16x1xf32>
    %199 = tpu.reciprocal %198 {approx = true} : vector<16x1xf32> -> vector<16x1xf32>
    %200 = vector.broadcast %199 : vector<16x1xf32> to vector<16x16xf32>
    %201 = arith.mulf %196, %200 : vector<16x16xf32>
    %cst_75 = arith.constant dense<0.000000e+00> : vector<16x8xf32>
    %202 = tpu.matmul %201, %188, %cst_75 {dimension_numbers = #tpu.dot_dimension_numbers<[1], [0], [0], [1], [0, 0, 1, 1], [], []>} : vector<16x16xf32>, vector<16x8xf32>, vector<16x8xf32> -> vector<16x8xf32>
    %203 = vector.extract_strided_slice %185 {offsets = [0, 8], sizes = [16, 8], strides = [1, 1]} : vector<16x128xf32> to vector<16x8xf32>
    %204 = vector.extract_strided_slice %185 {offsets = [0, 40], sizes = [16, 8], strides = [1, 1]} : vector<16x128xf32> to vector<16x8xf32>
    %205 = vector.extract_strided_slice %185 {offsets = [0, 72], sizes = [16, 8], strides = [1, 1]} : vector<16x128xf32> to vector<16x8xf32>
    %206 = tpu.transpose %204, [1, 0] : vector<16x8xf32> -> vector<8x16xf32>
    %cst_76 = arith.constant dense<0.000000e+00> : vector<16x16xf32>
    %207 = tpu.matmul %203, %206, %cst_76 {dimension_numbers = #tpu.dot_dimension_numbers<[1], [0], [0], [1], [0, 0, 1, 1], [], []>} : vector<16x8xf32>, vector<8x16xf32>, vector<16x16xf32> -> vector<16x16xf32>
    %208 = arith.addf %207, %1 : vector<16x16xf32>
    %cst_77 = arith.constant dense<0xFF800000> : vector<16xf32>
    %209 = vector.multi_reduction <maximumf>, %208, %cst_77 [1] : vector<16x16xf32> to vector<16xf32>
    %210 = vector.shape_cast %209 : vector<16xf32> to vector<16x1xf32>
    %211 = vector.broadcast %210 : vector<16x1xf32> to vector<16x16xf32>
    %212 = arith.subf %208, %211 : vector<16x16xf32>
    %213 = math.exp %212 : vector<16x16xf32>
    %cst_78 = arith.constant dense<0.000000e+00> : vector<16xf32>
    %214 = vector.multi_reduction <add>, %213, %cst_78 [1] : vector<16x16xf32> to vector<16xf32>
    %215 = vector.shape_cast %214 : vector<16xf32> to vector<16x1xf32>
    %216 = tpu.reciprocal %215 {approx = true} : vector<16x1xf32> -> vector<16x1xf32>
    %217 = vector.broadcast %216 : vector<16x1xf32> to vector<16x16xf32>
    %218 = arith.mulf %213, %217 : vector<16x16xf32>
    %cst_79 = arith.constant dense<0.000000e+00> : vector<16x8xf32>
    %219 = tpu.matmul %218, %205, %cst_79 {dimension_numbers = #tpu.dot_dimension_numbers<[1], [0], [0], [1], [0, 0, 1, 1], [], []>} : vector<16x16xf32>, vector<16x8xf32>, vector<16x8xf32> -> vector<16x8xf32>
    %220 = vector.extract_strided_slice %185 {offsets = [0, 16], sizes = [16, 8], strides = [1, 1]} : vector<16x128xf32> to vector<16x8xf32>
    %221 = vector.extract_strided_slice %185 {offsets = [0, 48], sizes = [16, 8], strides = [1, 1]} : vector<16x128xf32> to vector<16x8xf32>
    %222 = vector.extract_strided_slice %185 {offsets = [0, 80], sizes = [16, 8], strides = [1, 1]} : vector<16x128xf32> to vector<16x8xf32>
    %223 = tpu.transpose %221, [1, 0] : vector<16x8xf32> -> vector<8x16xf32>
    %cst_80 = arith.constant dense<0.000000e+00> : vector<16x16xf32>
    %224 = tpu.matmul %220, %223, %cst_80 {dimension_numbers = #tpu.dot_dimension_numbers<[1], [0], [0], [1], [0, 0, 1, 1], [], []>} : vector<16x8xf32>, vector<8x16xf32>, vector<16x16xf32> -> vector<16x16xf32>
    %225 = arith.addf %224, %1 : vector<16x16xf32>
    %cst_81 = arith.constant dense<0xFF800000> : vector<16xf32>
    %226 = vector.multi_reduction <maximumf>, %225, %cst_81 [1] : vector<16x16xf32> to vector<16xf32>
    %227 = vector.shape_cast %226 : vector<16xf32> to vector<16x1xf32>
    %228 = vector.broadcast %227 : vector<16x1xf32> to vector<16x16xf32>
    %229 = arith.subf %225, %228 : vector<16x16xf32>
    %230 = math.exp %229 : vector<16x16xf32>
    %cst_82 = arith.constant dense<0.000000e+00> : vector<16xf32>
    %231 = vector.multi_reduction <add>, %230, %cst_82 [1] : vector<16x16xf32> to vector<16xf32>
    %232 = vector.shape_cast %231 : vector<16xf32> to vector<16x1xf32>
    %233 = tpu.reciprocal %232 {approx = true} : vector<16x1xf32> -> vector<16x1xf32>
    %234 = vector.broadcast %233 : vector<16x1xf32> to vector<16x16xf32>
    %235 = arith.mulf %230, %234 : vector<16x16xf32>
    %cst_83 = arith.constant dense<0.000000e+00> : vector<16x8xf32>
    %236 = tpu.matmul %235, %222, %cst_83 {dimension_numbers = #tpu.dot_dimension_numbers<[1], [0], [0], [1], [0, 0, 1, 1], [], []>} : vector<16x16xf32>, vector<16x8xf32>, vector<16x8xf32> -> vector<16x8xf32>
    %237 = vector.extract_strided_slice %185 {offsets = [0, 24], sizes = [16, 8], strides = [1, 1]} : vector<16x128xf32> to vector<16x8xf32>
    %238 = vector.extract_strided_slice %185 {offsets = [0, 56], sizes = [16, 8], strides = [1, 1]} : vector<16x128xf32> to vector<16x8xf32>
    %239 = vector.extract_strided_slice %185 {offsets = [0, 88], sizes = [16, 8], strides = [1, 1]} : vector<16x128xf32> to vector<16x8xf32>
    %240 = tpu.transpose %238, [1, 0] : vector<16x8xf32> -> vector<8x16xf32>
    %cst_84 = arith.constant dense<0.000000e+00> : vector<16x16xf32>
    %241 = tpu.matmul %237, %240, %cst_84 {dimension_numbers = #tpu.dot_dimension_numbers<[1], [0], [0], [1], [0, 0, 1, 1], [], []>} : vector<16x8xf32>, vector<8x16xf32>, vector<16x16xf32> -> vector<16x16xf32>
    %242 = arith.addf %241, %1 : vector<16x16xf32>
    %cst_85 = arith.constant dense<0xFF800000> : vector<16xf32>
    %243 = vector.multi_reduction <maximumf>, %242, %cst_85 [1] : vector<16x16xf32> to vector<16xf32>
    %244 = vector.shape_cast %243 : vector<16xf32> to vector<16x1xf32>
    %245 = vector.broadcast %244 : vector<16x1xf32> to vector<16x16xf32>
    %246 = arith.subf %242, %245 : vector<16x16xf32>
    %247 = math.exp %246 : vector<16x16xf32>
    %cst_86 = arith.constant dense<0.000000e+00> : vector<16xf32>
    %248 = vector.multi_reduction <add>, %247, %cst_86 [1] : vector<16x16xf32> to vector<16xf32>
    %249 = vector.shape_cast %248 : vector<16xf32> to vector<16x1xf32>
    %250 = tpu.reciprocal %249 {approx = true} : vector<16x1xf32> -> vector<16x1xf32>
    %251 = vector.broadcast %250 : vector<16x1xf32> to vector<16x16xf32>
    %252 = arith.mulf %247, %251 : vector<16x16xf32>
    %cst_87 = arith.constant dense<0.000000e+00> : vector<16x8xf32>
    %253 = tpu.matmul %252, %239, %cst_87 {dimension_numbers = #tpu.dot_dimension_numbers<[1], [0], [0], [1], [0, 0, 1, 1], [], []>} : vector<16x16xf32>, vector<16x8xf32>, vector<16x8xf32> -> vector<16x8xf32>
    %254 = tpu.concatenate %202, %219, %236, %253 in 1 : vector<16x8xf32>, vector<16x8xf32>, vector<16x8xf32>, vector<16x8xf32> -> vector<16x32xf32>
    %c1_88 = arith.constant 1 : index
    %c0_89 = arith.constant 0 : index
    %c0_90 = arith.constant 0 : index
    %255 = vector.load %arg3[%c1_88, %c0_89, %c0_90] : memref<2x32x32xf32, #tpu.memory_space<vmem>>, vector<1x32x32xf32>
    %256 = vector.shape_cast %255 : vector<1x32x32xf32> to vector<32x32xf32>
    %cst_91 = arith.constant dense<0.000000e+00> : vector<16x32xf32>
    %257 = tpu.matmul %254, %256, %cst_91 {dimension_numbers = #tpu.dot_dimension_numbers<[1], [0], [0], [1], [0, 0, 1, 1], [], []>} : vector<16x32xf32>, vector<32x32xf32>, vector<16x32xf32> -> vector<16x32xf32>
    %258 = arith.addf %153, %257 : vector<16x32xf32>
    %259 = vector.broadcast %156 : vector<1x32xf32> to vector<16x32xf32>
    %260 = arith.addf %258, %259 : vector<16x32xf32>
    %cst_92 = arith.constant dense<0.000000e+00> : vector<16xf32>
    %261 = vector.multi_reduction <add>, %260, %cst_92 [1] : vector<16x32xf32> to vector<16xf32>
    %262 = vector.shape_cast %261 : vector<16xf32> to vector<16x1xf32>
    %cst_93 = arith.constant 3.200000e+01 : f32
    %263 = vector.broadcast %cst_93 : f32 to vector<16x1xf32>
    %264 = arith.divf %262, %263 : vector<16x1xf32>
    %265 = arith.mulf %260, %260 : vector<16x32xf32>
    %cst_94 = arith.constant dense<0.000000e+00> : vector<16xf32>
    %266 = vector.multi_reduction <add>, %265, %cst_94 [1] : vector<16x32xf32> to vector<16xf32>
    %267 = vector.shape_cast %266 : vector<16xf32> to vector<16x1xf32>
    %cst_95 = arith.constant 3.200000e+01 : f32
    %268 = vector.broadcast %cst_95 : f32 to vector<16x1xf32>
    %269 = arith.divf %267, %268 : vector<16x1xf32>
    %270 = arith.mulf %264, %264 : vector<16x1xf32>
    %271 = arith.subf %269, %270 : vector<16x1xf32>
    %272 = vector.broadcast %264 : vector<16x1xf32> to vector<16x32xf32>
    %273 = arith.subf %260, %272 : vector<16x32xf32>
    %cst_96 = arith.constant 9.99999974E-6 : f32
    %274 = vector.broadcast %cst_96 : f32 to vector<16x1xf32>
    %275 = arith.addf %271, %274 : vector<16x1xf32>
    %276 = math.rsqrt %275 : vector<16x1xf32>
    %277 = vector.broadcast %276 : vector<16x1xf32> to vector<16x32xf32>
    %278 = arith.mulf %273, %277 : vector<16x32xf32>
    %279 = vector.broadcast %157 : vector<1x32xf32> to vector<16x32xf32>
    %280 = arith.mulf %278, %279 : vector<16x32xf32>
    %281 = vector.broadcast %158 : vector<1x32xf32> to vector<16x32xf32>
    %282 = arith.addf %280, %281 : vector<16x32xf32>
    %c1_97 = arith.constant 1 : index
    %c0_98 = arith.constant 0 : index
    %c0_99 = arith.constant 0 : index
    %283 = vector.load %arg4[%c1_97, %c0_98, %c0_99] : memref<2x32x64xf32, #tpu.memory_space<vmem>>, vector<1x32x64xf32>
    %284 = vector.shape_cast %283 : vector<1x32x64xf32> to vector<32x64xf32>
    %cst_100 = arith.constant dense<0.000000e+00> : vector<16x64xf32>
    %285 = tpu.matmul %282, %284, %cst_100 {dimension_numbers = #tpu.dot_dimension_numbers<[1], [0], [0], [1], [0, 0, 1, 1], [], []>} : vector<16x32xf32>, vector<32x64xf32>, vector<16x64xf32> -> vector<16x64xf32>
    %286 = vector.broadcast %159 : vector<1x64xf32> to vector<16x64xf32>
    %287 = arith.addf %285, %286 : vector<16x64xf32>
    %cst_101 = arith.constant 5.000000e-01 : f32
    %288 = vector.broadcast %cst_101 : f32 to vector<16x64xf32>
    %289 = arith.mulf %288, %287 : vector<16x64xf32>
    %cst_102 = arith.constant 0.707106769 : f32
    %290 = vector.broadcast %cst_102 : f32 to vector<16x64xf32>
    %291 = arith.mulf %287, %290 : vector<16x64xf32>
    %292 = math.erf %291 : vector<16x64xf32>
    %cst_103 = arith.constant 1.000000e+00 : f32
    %293 = vector.broadcast %cst_103 : f32 to vector<16x64xf32>
    %294 = arith.addf %293, %292 : vector<16x64xf32>
    %295 = arith.mulf %289, %294 : vector<16x64xf32>
    %c1_104 = arith.constant 1 : index
    %c0_105 = arith.constant 0 : index
    %c0_106 = arith.constant 0 : index
    %296 = vector.load %arg5[%c1_104, %c0_105, %c0_106] : memref<2x64x32xf32, #tpu.memory_space<vmem>>, vector<1x64x32xf32>
    %297 = vector.shape_cast %296 : vector<1x64x32xf32> to vector<64x32xf32>
    %cst_107 = arith.constant dense<0.000000e+00> : vector<16x32xf32>
    %298 = tpu.matmul %295, %297, %cst_107 {dimension_numbers = #tpu.dot_dimension_numbers<[1], [0], [0], [1], [0, 0, 1, 1], [], []>} : vector<16x64xf32>, vector<64x32xf32>, vector<16x32xf32> -> vector<16x32xf32>
    %299 = arith.addf %260, %298 : vector<16x32xf32>
    %300 = vector.broadcast %160 : vector<1x32xf32> to vector<16x32xf32>
    %301 = arith.addf %299, %300 : vector<16x32xf32>
    %c50 = arith.constant 50 : index
    %c0_108 = arith.constant 0 : index
    %302 = vector.load %arg1[%c50, %c0_108] : memref<56x128xf32, #tpu.memory_space<vmem>>, vector<1x32xf32>
    %c51 = arith.constant 51 : index
    %c0_109 = arith.constant 0 : index
    %303 = vector.load %arg1[%c51, %c0_109] : memref<56x128xf32, #tpu.memory_space<vmem>>, vector<1x32xf32>
    %cst_110 = arith.constant dense<0.000000e+00> : vector<16xf32>
    %304 = vector.multi_reduction <add>, %301, %cst_110 [1] : vector<16x32xf32> to vector<16xf32>
    %305 = vector.shape_cast %304 : vector<16xf32> to vector<16x1xf32>
    %cst_111 = arith.constant 3.200000e+01 : f32
    %306 = vector.broadcast %cst_111 : f32 to vector<16x1xf32>
    %307 = arith.divf %305, %306 : vector<16x1xf32>
    %308 = arith.mulf %301, %301 : vector<16x32xf32>
    %cst_112 = arith.constant dense<0.000000e+00> : vector<16xf32>
    %309 = vector.multi_reduction <add>, %308, %cst_112 [1] : vector<16x32xf32> to vector<16xf32>
    %310 = vector.shape_cast %309 : vector<16xf32> to vector<16x1xf32>
    %cst_113 = arith.constant 3.200000e+01 : f32
    %311 = vector.broadcast %cst_113 : f32 to vector<16x1xf32>
    %312 = arith.divf %310, %311 : vector<16x1xf32>
    %313 = arith.mulf %307, %307 : vector<16x1xf32>
    %314 = arith.subf %312, %313 : vector<16x1xf32>
    %315 = vector.broadcast %307 : vector<16x1xf32> to vector<16x32xf32>
    %316 = arith.subf %301, %315 : vector<16x32xf32>
    %cst_114 = arith.constant 9.99999974E-6 : f32
    %317 = vector.broadcast %cst_114 : f32 to vector<16x1xf32>
    %318 = arith.addf %314, %317 : vector<16x1xf32>
    %319 = math.rsqrt %318 : vector<16x1xf32>
    %320 = vector.broadcast %319 : vector<16x1xf32> to vector<16x32xf32>
    %321 = arith.mulf %316, %320 : vector<16x32xf32>
    %322 = vector.broadcast %302 : vector<1x32xf32> to vector<16x32xf32>
    %323 = arith.mulf %321, %322 : vector<16x32xf32>
    %324 = vector.broadcast %303 : vector<1x32xf32> to vector<16x32xf32>
    %325 = arith.addf %323, %324 : vector<16x32xf32>
    %c0_115 = arith.constant 0 : index
    %c0_116 = arith.constant 0 : index
    %326 = vector.load %arg6[%c0_115, %c0_116] : memref<32x128xf32, #tpu.memory_space<vmem>>, vector<32x128xf32>
    %cst_117 = arith.constant dense<0.000000e+00> : vector<16x128xf32>
    %327 = tpu.matmul %325, %326, %cst_117 {dimension_numbers = #tpu.dot_dimension_numbers<[1], [0], [0], [1], [0, 0, 1, 1], [], []>} : vector<16x32xf32>, vector<32x128xf32>, vector<16x128xf32> -> vector<16x128xf32>
    %c52 = arith.constant 52 : index
    %c0_118 = arith.constant 0 : index
    %328 = vector.load %arg1[%c52, %c0_118] : memref<56x128xf32, #tpu.memory_space<vmem>>, vector<1x128xf32>
    %329 = vector.broadcast %328 : vector<1x128xf32> to vector<16x128xf32>
    %330 = arith.addf %327, %329 : vector<16x128xf32>
    %c0_119 = arith.constant 0 : index
    %c0_120 = arith.constant 0 : index
    %331 = vector.load %arg7[%c0_119, %c0_120] : memref<16x128xf32, #tpu.memory_space<vmem>>, vector<16x128xf32>
    tpu.vector_store %arg7[%c0_119, %c0_120], %330 {strides = array<i32>} : memref<16x128xf32, #tpu.memory_space<vmem>>, vector<16x128xf32>,
    return
  }
}

</mosaic_0001>

<bundles_post_ra>
// kernel: tracegpt_forward.1
= control target key start
LH: loop header
LB: loop body
LE: loop exit
PB: predicated region body
PF: predicated region fallthrough
CT: control target
= control target key end

     0   :  { %12 = vsyncpa [#allocation3], 0  ;;  %s3469_s24 = smov [#allocation2]   ;;  %s4027_s0 = inlined_call_operand.vmem [shape: f32[16,4], index: 0, kind: input, shape index: {}]   ;;  %s4028_s1 = inlined_call_operand.hbm [shape: f32[56,128], index: 1, kind: input, shape index: {}]   ;;  %s4029_s2 = inlined_call_operand.vmem [shape: f32[2,32,128], index: 2, kind: input, shape index: {}]   ;;  %s4030_s3 = inlined_call_operand.vmem [shape: f32[2,32,32], index: 3, kind: input, shape index: {}]   ;;  %s4031_s4 = inlined_call_operand.vmem [shape: f32[2,32,64], index: 4, kind: input, shape index: {}]   ;;  %s4032_s5 = inlined_call_operand.vmem [shape: f32[2,64,32], index: 5, kind: input, shape index: {}]   ;;  %s4033_s6 = inlined_call_operand.vmem [shape: f32[32,128], index: 6, kind: input, shape index: {}]   ;;  %s4034_s7 = inlined_call_operand.vmem [shape: f32[16,128], index: 7, kind: output, shape index: {}]  }
   0x1   :  { %s20_s25 = sshll.u32 %s3469_s24, 4  ;;  %s21_s25 = int_to_ptr.vmem [resolvable:$true] %s20_s25 }
   0x2   :  { %s3455_s26 = scalar_lea.vmem %s21_s25, 896  ;;  %p3460_p1 = scmp.lt.s32.totalorder %s21_s25, %s21_s25 }
   0x3   :  { %p3456_p0 = scmp.ne.s32.totalorder %s21_s25, %s3455_s26  ;;  %p3461_p2 = scmp.lt.s32.totalorder %s3455_s26, %s3455_s26 }
   0x5   :  { %p3462_p3 = por %p3461_p2, %p3460_p1 }
   0x7   :  { %p3463_p4 = pnand %p3462_p3, %p3456_p0 }
   0x9   :  { %3466 = shalt.err (!%p3463_p4)
}
   0xa   :  { %s3470_s27 = smov 128   ;;  %s3471_s28 = smov 8  }
   0xb   :  { %26 = dma.hbm_to_vmem [thread:$0]  %s4028_s1, 896, %s21_s25, [#allocation3], %s3470_s27, %s3470_s27, %s3471_s28  }
   0xc   :  { %3467 = dma.done.wait [#allocation3], 896  }
   0xd   :  { %3468 = vsyncadd [#allocation3], 4294966400  ;;  %vm54_vm0 = vcmask 1043456   ;;  %vm47_vm1 = vcmask 31744   ;;  %v46_v0 = vld [vmem:[#allocation2 + $0x20] sm:$0xf] }
   0xe   :  { %v40_v1 = vld [vmem:[%s4027_s0] sm:$0xff]  ;;  %v41_v2 = vld [vmem:[%s4027_s0 + $0x8] sm:$0xff]  ;;  %3105 = vmatprep.subr.msk.mxu0 %vm54_vm0, %v46_v0  ;;  %v45_v3 = vld [vmem:[#allocation2 + $0x18] sm:$0xff]  ;;  %vm140_vm2 = vcmask 261120   ;;  %vm275_vm3 = vcmask 64512   ;;  %s3472_s18 = smov 96  }
   0xf   :  { %3107 = vmatprep.mubr.msk.f32.mxu0 %vm47_vm1, %v40_v1  ;;  %3106 = vmatpush3.msk.msra.mxu0 %vm54_vm0, %v46_v0  ;;  %v44_v5 = vld [vmem:[#allocation2 + $0x10] sm:$0xff]  ;;  %v187_v15 = vld [vmem:[%s4029_s2 + $0x18] sm:$0xff]  ;;  %v185_v17 = vld [vmem:[%s4029_s2 + $0x8] sm:$0xff]  ;;  %vm359_vm4 = vcmask 130048   ;;  %s3473_s19 = smov 64   ;;  %s3474_s20 = smov 88  }
  0x10   :  { %3108 = vmatmul.mubr.msk.f32.vlgmr.msra.gmra.mxu0 %vm47_vm1, %v41_v2  ;;  %v186_v16 = vld [vmem:[%s4029_s2 + $0x10] sm:$0xff]  ;;  %3110 = vmatprep.subr.mxu1 %v187_v15  ;;  %v184_v18 = vld [vmem:[%s4029_s2] sm:$0xff]  ;;  %v3581_v49 = vld [vmem:[#allocation2 + $0x8] sm:$0xff]  ;;  %s3475_s21 = smov 120   ;;  %s3476_s22 = smov 56   ;;  %vm1097_vm5 = vcmask 195584  }
  0x11   :  { %3111 = vmatpush3.msra.mxu1 %v187_v15  ;;  %v2873_v35 = vld [vmem:[#allocation2 + $0x24] ss:$0 sm:$0xff]  ;;  %v2874_v37 = vld [vmem:[#allocation2 + $0x25] ss:$0 sm:$0xff]  ;;  %s3477_s23 = smov 80   ;;  %s3478_s24 = smov 112  }
  0x12   :  { %3112 = vmatprep.subr.mxu1 %v186_v16  ;;  %v3583_v51 = vld [vmem:[#allocation2] sm:$0xff]  ;;  %s3479_s25 = smov 48   ;;  %s3480_s26 = smov 72   ;;  %vm1342_vm6 = vcmask 523264  }
  0x13   :  { %3113 = vmatpush3.msra.mxu1 %v186_v16  ;;  %s3481_s27 = smov 104   ;;  %s3482_s29 = smov 40  }
  0x14   :  { %3114 = vmatprep.subr.mxu1 %v185_v17  ;;  %s3483_s30 = smov 16   ;;  %s3484_s14 = smov 24  }
  0x15   :  { %3115 = vmatpush3.msra.mxu1 %v185_v17 }
  0x16   :  { %3116 = vmatprep.subr.mxu1 %v184_v18 }
  0x17   :  { %3117 = vmatpush3.msra.mxu1 %v184_v18 }
  0xd0   :  { %v3109_v4 = vpop.f32.mrf.mxu0 }
  0xd1   :  { %v3535_v7 = vadd.f32 %v3109_v4, %v45_v3 }
  0xd2   :  { %v124_v6 = vpop.f32.mrf.mxu0 }
  0xd3   :  { %v3537_v8 = vadd.f32 %v124_v6, %v44_v5  ;;  %v151_v12 = vmul.f32 %v3535_v7, %v3535_v7  ;;  %v144_v13 = vsel %vm140_vm2, %v3535_v7, 0.0 }
  0xd5   :  { %v141_v9 = vsel %vm140_vm2, %v3537_v8, 0.0  ;;  %v150_v10 = vmul.f32 %v3537_v8, %v3537_v8  ;;  %v155_v14 = vsel %vm140_vm2, %v151_v12, 0.0 }
  0xd6   :  { %142 = vadd.xlane.f32.xlu0 %v141_v9 }
  0xd7   :  { %v152_v11 = vsel %vm140_vm2, %v150_v10, 0.0 }
  0xd8   :  { %153 = vadd.xlane.f32.xlu1 %v152_v11 }
  0xda   :  { %145 = vadd.xlane.f32.xlu0 %v144_v13 }
  0xdc   :  { %156 = vadd.xlane.f32.xlu1 %v155_v14 }
 0x15f   :  { %v143_v19 = vpop.xlane.xlu0 %142 }
 0x160   :  { %v148_v20 = vmul.f32 0.03125, %v143_v19 }
 0x161   :  { %v154_v21 = vpop.xlane.xlu1 %153 }
 0x162   :  { %v160_v22 = vmul.f32 %v148_v20, %v148_v20  ;;  %v158_v23 = vmul.f32 0.03125, %v154_v21  ;;  %v164_v33 = vsub.f32 %v3537_v8, %v148_v20 }
 0x163   :  { %v146_v24 = vpop.xlane.xlu0 %145 }
 0x164   :  { %v162_v25 = vsub.f32 %v158_v23, %v160_v22  ;;  %v149_v26 = vmul.f32 0.03125, %v146_v24 }
 0x165   :  { %v157_v27 = vpop.xlane.xlu1 %156 }
 0x166   :  { %v166_v28 = vadd.f32 1e-05, %v162_v25  ;;  %v161_v29 = vmul.f32 %v149_v26, %v149_v26  ;;  %v159_v30 = vmul.f32 0.03125, %v157_v27  ;;  %v165_v38 = vsub.f32 %v3535_v7, %v149_v26 }
 0x168   :  { %3353 = vrsqrt.f32 %v166_v28  ;;  %v163_v31 = vsub.f32 %v159_v30, %v161_v29 }
 0x16a   :  { %v167_v32 = vadd.f32 1e-05, %v163_v31 }
 0x16c   :  { %3355 = vrsqrt.f32 %v167_v32 }
 0x175   :  { %v3354_v34 = vpop.eup %3353 }
 0x176   :  { %v170_v36 = vmul.f32 %v3354_v34, %v164_v33 }
 0x178   :  { %v176_v39 = vmul.f32 %v2873_v35, %v170_v36 }
 0x179   :  { %v3356_v40 = vpop.eup %3355 }
 0x17a   :  { %v171_v41 = vmul.f32 %v3356_v40, %v165_v38  ;;  %v182_v42 = vadd.f32 %v2874_v37, %v176_v39 }
 0x17c   :  { %v177_v43 = vmul.f32 %v2873_v35, %v171_v41  ;;  %3118 = vmatprep.mubr.msk.f32.mxu1 %vm140_vm2, %v182_v42 }
 0x17e   :  { %v183_v44 = vadd.f32 %v2874_v37, %v177_v43 }
 0x180   :  { %3119 = vmatmul.mubr.msk.f32.vlgmr.msra.gmra.mxu1 %vm140_vm2, %v183_v44 }
 0x240   :  { %v3565_v45 = vpop.f32.mrf.mxu1 }
 0x241   :  { %273 = vrot.lane.b32.xlu0 %v3565_v45, %s3472_s18 }
 0x242   :  { %v3569_v46 = vpop.f32.mrf.mxu1 }
 0x243   :  { %271 = vrot.lane.b32.xlu1 %v3569_v46, %s3472_s18  ;;  %3125 = vmatprep.mubr.msk.f32.mxu0 %vm275_vm3, %v3569_v46 }
 0x2b3   :  { %v274_v47 = vpop.permute.xlu0 %273 }
 0x2b4   :  { %3121 = vmatprep.subr.msk.mxu0 %vm275_vm3, %v274_v47 }
 0x2b5   :  { %3122 = vmatpush3.xpose.msk.msra.mxu0 %vm275_vm3, %v274_v47  ;;  %v272_v48 = vpop.permute.xlu1 %271 }
 0x2b6   :  { %3123 = vmatprep.subr.msk.mxu0 %vm275_vm3, %v272_v48 }
 0x2b9   :  { %3124 = vmatpush3.xpose.msk.msra.mxu0 %vm275_vm3, %v272_v48 }
 0x2bc   :  { %3126 = vmatmul.mubr.msk.f32.vlgmr.msra.gmra.mxu0 %vm275_vm3, %v3565_v45 }
 0x37c   :  { %v3127_v50 = vpop.f32.mrf.mxu0 }
 0x37d   :  { %v356_v52 = vadd.f32 %v3127_v50, %v3581_v49 }
 0x37e   :  { %v350_v53 = vpop.f32.mrf.mxu0 }
 0x37f   :  { %v351_v54 = vadd.f32 %v350_v53, %v3583_v51  ;;  %v363_v55 = vsel %vm359_vm4, %v356_v52, -inf }
 0x380   :  { %364 = vmax.xlane.f32.xlu0 %v363_v55 }
 0x381   :  { %v360_v56 = vsel %vm359_vm4, %v351_v54, -inf }
 0x382   :  { %361 = vmax.xlane.f32.xlu1 %v360_v56 }
 0x409   :  { %v365_v57 = vpop.xlane.xlu0 %364 }
 0x40a   :  { %v367_v58 = vsub.f32 %v356_v52, %v365_v57 }
 0x40b   :  { %v362_v59 = vpop.xlane.xlu1 %361 }
 0x40c   :  { %v370_v60 = vmul.f32 1.442695, %v367_v58  ;;  %v366_v61 = vsub.f32 %v351_v54, %v362_v59 }
 0x40e   :  { %3357 = vpow2.f32 %v370_v60  ;;  %v368_v62 = vmul.f32 1.442695, %v366_v61 }
 0x410   :  { %3359 = vpow2.f32 %v368_v62 }
 0x41b   :  { %v3358_v63 = vpop.eup %3357 }
 0x41c   :  { %v375_v0 = vsel %vm359_vm4, %v3358_v63, 0.0 }
 0x41d   :  { %v3360_v1 = vpop.eup %3359  ;;  %376 = vadd.xlane.f32.xlu1 %v375_v0 }
 0x41e   :  { %v372_v2 = vsel %vm359_vm4, %v3360_v1, 0.0 }
 0x41f   :  { %373 = vadd.xlane.f32.xlu0 %v372_v2 }
 0x42e   :  { %382 = vrot.lane.b32.xlu1 %v3569_v46, %s3473_s19 }
 0x432   :  { %475 = vrot.lane.b32.xlu1 %v3565_v45, %s3474_s20 }
 0x435   :  { %384 = vrot.lane.b32.xlu0 %v3565_v45, %s3473_s19 }
 0x436   :  { %473 = vrot.lane.b32.xlu1 %v3569_v46, %s3474_s20 }
 0x439   :  { %469 = vrot.lane.b32.xlu0 %v3569_v46, %s3475_s21 }
 0x43a   :  { %471 = vrot.lane.b32.xlu1 %v3565_v45, %s3475_s21 }
 0x4a6   :  { %v377_v3 = vpop.xlane.xlu1 %376 }
 0x4a7   :  { %3361 = vrcp.f32 %v377_v3 }
 0x4a8   :  { %v374_v4 = vpop.xlane.xlu0 %373 }
 0x4a9   :  { %3363 = vrcp.f32 %v374_v4 }
 0x4aa   :  { %v383_v5 = vpop.permute.xlu1 %382 }
 0x4ac   :  { %v385_v6 = vpop.permute.xlu0 %384 }
 0x4ad   :  { %3128 = vmatprep.subr.mxu0 %v385_v6 }
 0x4ae   :  { %3129 = vmatpush3.msra.mxu0 %v385_v6  ;;  %v476_v9 = vpop.permute.xlu1 %475 }
 0x4af   :  { %3130 = vmatprep.subr.mxu0 %v383_v5 }
 0x4b0   :  { %3131 = vmatpush3.msra.mxu0 %v383_v5  ;;  %v470_v14 = vpop.permute.xlu0 %469 }
 0x4b1   :  { %3135 = vmatprep.subr.msk.mxu0 %vm275_vm3, %v476_v9 }
 0x4b2   :  { %v474_v15 = vpop.permute.xlu1 %473 }
 0x4b4   :  { %v3362_v10 = vpop.eup %3361 }
 0x4b5   :  { %v381_v13 = vmul.f32 %v3362_v10, %v3358_v63 }
 0x4b6   :  { %v3364_v11 = vpop.eup %3363  ;;  %v472_v16 = vpop.permute.xlu1 %471 }
 0x4b7   :  { %v380_v12 = vmul.f32 %v3364_v11, %v3360_v1 }
 0x4b9   :  { %3132 = vmatprep.mubr.msk.f32.mxu0 %vm359_vm4, %v380_v12 }
 0x4ba   :  { %3133 = vmatmul.mubr.msk.f32.vlgmr.msra.gmra.mxu0 %vm359_vm4, %v381_v13 }
 0x4bb   :  { %3136 = vmatpush3.xpose.msk.msra.mxu0 %vm275_vm3, %v476_v9  ;;  %3139 = vmatprep.mubr.msk.f32.mxu0 %vm275_vm3, %v470_v14 }
 0x4bc   :  { %3137 = vmatprep.subr.msk.mxu0 %vm275_vm3, %v474_v15 }
 0x4bf   :  { %3138 = vmatpush3.xpose.msk.msra.mxu0 %vm275_vm3, %v474_v15 }
 0x4c2   :  { %3140 = vmatmul.mubr.msk.f32.vlgmr.msra.gmra.mxu0 %vm275_vm3, %v472_v16 }
 0x57a   :  { %v3611_v17 = vpop.f32.mrf.mxu0 }
 0x57c   :  { %v3613_v18 = vpop.f32.mrf.mxu0 }
 0x582   :  { %v3141_v19 = vpop.f32.mrf.mxu0 }
 0x583   :  { %v557_v20 = vadd.f32 %v3141_v19, %v3581_v49 }
 0x584   :  { %v551_v21 = vpop.f32.mrf.mxu0 }
 0x585   :  { %v552_v22 = vadd.f32 %v551_v21, %v3583_v51  ;;  %v563_v23 = vsel %vm359_vm4, %v557_v20, -inf }
 0x586   :  { %564 = vmax.xlane.f32.xlu1 %v563_v23 }
 0x587   :  { %v560_v24 = vsel %vm359_vm4, %v552_v22, -inf }
 0x588   :  { %561 = vmax.xlane.f32.xlu0 %v560_v24 }
 0x597   :  { %582 = vrot.lane.b32.xlu1 %v3569_v46, %s3476_s22 }
 0x59b   :  { %675 = vrot.lane.b32.xlu1 %v3565_v45, %s3477_s23 }
 0x59f   :  { %673 = vrot.lane.b32.xlu1 %v3569_v46, %s3477_s23 }
 0x5a3   :  { %671 = vrot.lane.b32.xlu1 %v3565_v45, %s3478_s24 }
 0x60f   :  { %v565_v25 = vpop.xlane.xlu1 %564 }
 0x610   :  { %v567_v26 = vsub.f32 %v557_v20, %v565_v25 }
 0x611   :  { %v562_v27 = vpop.xlane.xlu0 %561 }
 0x612   :  { %v570_v28 = vmul.f32 1.442695, %v567_v26  ;;  %v566_v29 = vsub.f32 %v552_v22, %v562_v27 }
 0x613   :  { %v583_v37 = vpop.permute.xlu1 %582 }
 0x614   :  { %3365 = vpow2.f32 %v570_v28  ;;  %v568_v30 = vmul.f32 1.442695, %v566_v29 }
 0x616   :  { %3367 = vpow2.f32 %v568_v30 }
 0x617   :  { %v676_v39 = vpop.permute.xlu1 %675 }
 0x61b   :  { %v674_v47 = vpop.permute.xlu1 %673 }
 0x61f   :  { %v672_v48 = vpop.permute.xlu1 %671 }
 0x621   :  { %v3366_v31 = vpop.eup %3365 }
 0x622   :  { %v575_v32 = vsel %vm359_vm4, %v3366_v31, 0.0 }
 0x623   :  { %v3368_v33 = vpop.eup %3367  ;;  %576 = vadd.xlane.f32.xlu0 %v575_v32 }
 0x624   :  { %v572_v34 = vsel %vm359_vm4, %v3368_v33, 0.0 }
 0x627   :  { %573 = vadd.xlane.f32.xlu0 %v572_v34 }
 0x63d   :  { %584 = vrot.lane.b32.xlu0 %v3565_v45, %s3476_s22 }
 0x641   :  { %669 = vrot.lane.b32.xlu0 %v3569_v46, %s3478_s24 }
 0x6ac   :  { %v577_v35 = vpop.xlane.xlu0 %576 }
 0x6ad   :  { %3369 = vrcp.f32 %v577_v35 }
 0x6b0   :  { %v574_v36 = vpop.xlane.xlu0 %573 }
 0x6b1   :  { %3371 = vrcp.f32 %v574_v36 }
 0x6b4   :  { %v585_v38 = vpop.permute.xlu0 %584 }
 0x6b5   :  { %3142 = vmatprep.subr.mxu1 %v585_v38 }
 0x6b6   :  { %3143 = vmatpush3.msra.mxu1 %v585_v38 }
 0x6b7   :  { %3144 = vmatprep.subr.mxu1 %v583_v37 }
 0x6b8   :  { %3145 = vmatpush3.msra.mxu1 %v583_v37  ;;  %v670_v44 = vpop.permute.xlu0 %669 }
 0x6b9   :  { %3149 = vmatprep.subr.msk.mxu1 %vm275_vm3, %v676_v39 }
 0x6ba   :  { %v3370_v40 = vpop.eup %3369 }
 0x6bb   :  { %v581_v43 = vmul.f32 %v3370_v40, %v3366_v31 }
 0x6be   :  { %v3372_v41 = vpop.eup %3371 }
 0x6bf   :  { %v580_v42 = vmul.f32 %v3372_v41, %v3368_v33 }
 0x6c1   :  { %3146 = vmatprep.mubr.msk.f32.mxu1 %vm359_vm4, %v580_v42 }
 0x6c2   :  { %3147 = vmatmul.mubr.msk.f32.vlgmr.msra.gmra.mxu1 %vm359_vm4, %v581_v43 }
 0x6c3   :  { %3150 = vmatpush3.xpose.msk.msra.mxu1 %vm275_vm3, %v676_v39  ;;  %3153 = vmatprep.mubr.msk.f32.mxu1 %vm275_vm3, %v670_v44 }
 0x6c4   :  { %3151 = vmatprep.subr.msk.mxu1 %vm275_vm3, %v674_v47 }
 0x6c7   :  { %3152 = vmatpush3.xpose.msk.msra.mxu1 %vm275_vm3, %v674_v47 }
 0x6ca   :  { %3154 = vmatmul.mubr.msk.f32.vlgmr.msra.gmra.mxu1 %vm275_vm3, %v672_v48  ;;  %v1102_v48 = vld [vmem:[%s4030_s3 + $0x10] sm:$0xff] }
 0x782   :  { %v3641_v50 = vpop.f32.mrf.mxu1 }
 0x784   :  { %v3643_v52 = vpop.f32.mrf.mxu1 }
 0x78a   :  { %v3155_v53 = vpop.f32.mrf.mxu1 }
 0x78b   :  { %v757_v54 = vadd.f32 %v3155_v53, %v3581_v49 }
 0x78c   :  { %v751_v55 = vpop.f32.mrf.mxu1 }
 0x78d   :  { %v752_v56 = vadd.f32 %v751_v55, %v3583_v51  ;;  %v763_v57 = vsel %vm359_vm4, %v757_v54, -inf }
 0x78e   :  { %764 = vmax.xlane.f32.xlu1 %v763_v57 }
 0x78f   :  { %v760_v58 = vsel %vm359_vm4, %v752_v56, -inf }
 0x790   :  { %761 = vmax.xlane.f32.xlu0 %v760_v58 }
 0x79f   :  { %782 = vrot.lane.b32.xlu1 %v3569_v46, %s3479_s25 }
 0x7a3   :  { %875 = vrot.lane.b32.xlu1 %v3565_v45, %s3480_s26 }
 0x7a7   :  { %873 = vrot.lane.b32.xlu1 %v3569_v46, %s3480_s26 }
 0x7ab   :  { %871 = vrot.lane.b32.xlu1 %v3565_v45, %s3481_s27 }
 0x817   :  { %v765_v59 = vpop.xlane.xlu1 %764 }
 0x818   :  { %v767_v60 = vsub.f32 %v757_v54, %v765_v59 }
 0x819   :  { %v762_v61 = vpop.xlane.xlu0 %761 }
 0x81a   :  { %v770_v62 = vmul.f32 1.442695, %v767_v60  ;;  %v766_v63 = vsub.f32 %v752_v56, %v762_v61 }
 0x81b   :  { %v783_v9 = vpop.permute.xlu1 %782 }
 0x81c   :  { %3373 = vpow2.f32 %v770_v62  ;;  %v768_v0 = vmul.f32 1.442695, %v766_v63 }
 0x81e   :  { %3375 = vpow2.f32 %v768_v0 }
 0x81f   :  { %v876_v11 = vpop.permute.xlu1 %875 }
 0x823   :  { %v874_v19 = vpop.permute.xlu1 %873 }
 0x827   :  { %v872_v20 = vpop.permute.xlu1 %871 }
 0x829   :  { %v3374_v1 = vpop.eup %3373 }
 0x82a   :  { %v775_v2 = vsel %vm359_vm4, %v3374_v1, 0.0 }
 0x82b   :  { %v3376_v3 = vpop.eup %3375  ;;  %776 = vadd.xlane.f32.xlu0 %v775_v2 }
 0x82c   :  { %v772_v4 = vsel %vm359_vm4, %v3376_v3, 0.0 }
 0x82f   :  { %773 = vadd.xlane.f32.xlu0 %v772_v4 }
 0x845   :  { %784 = vrot.lane.b32.xlu0 %v3565_v45, %s3479_s25 }
 0x849   :  { %869 = vrot.lane.b32.xlu0 %v3569_v46, %s3481_s27 }
 0x8b4   :  { %v777_v5 = vpop.xlane.xlu0 %776 }
 0x8b5   :  { %3377 = vrcp.f32 %v777_v5 }
 0x8b8   :  { %v774_v6 = vpop.xlane.xlu0 %773 }
 0x8b9   :  { %3379 = vrcp.f32 %v774_v6 }
 0x8bc   :  { %v785_v10 = vpop.permute.xlu0 %784 }
 0x8bd   :  { %3156 = vmatprep.subr.mxu0 %v785_v10 }
 0x8be   :  { %3157 = vmatpush3.msra.mxu0 %v785_v10 }
 0x8bf   :  { %3158 = vmatprep.subr.mxu0 %v783_v9 }
 0x8c0   :  { %3159 = vmatpush3.msra.mxu0 %v783_v9  ;;  %v870_v16 = vpop.permute.xlu0 %869 }
 0x8c1   :  { %3163 = vmatprep.subr.msk.mxu0 %vm275_vm3, %v876_v11 }
 0x8c2   :  { %v3378_v12 = vpop.eup %3377 }
 0x8c3   :  { %v781_v15 = vmul.f32 %v3378_v12, %v3374_v1 }
 0x8c6   :  { %v3380_v13 = vpop.eup %3379 }
 0x8c7   :  { %v780_v14 = vmul.f32 %v3380_v13, %v3376_v3  ;;  %v2903_v3 = vld [vmem:[#allocation2 + $0x26] ss:$0 sm:$0xff] }
 0x8c9   :  { %3160 = vmatprep.mubr.msk.f32.mxu0 %vm359_vm4, %v780_v14  ;;  %v1238_v14 = vld [vmem:[%s4031_s4 + $0x18] sm:$0xff] }
 0x8ca   :  { %3161 = vmatmul.mubr.msk.f32.vlgmr.msra.gmra.mxu0 %vm359_vm4, %v781_v15  ;;  %v1237_v15 = vld [vmem:[%s4031_s4 + $0x10] sm:$0xff] }
 0x8cb   :  { %3164 = vmatpush3.xpose.msk.msra.mxu0 %vm275_vm3, %v876_v11  ;;  %3167 = vmatprep.mubr.msk.f32.mxu0 %vm275_vm3, %v870_v16  ;;  %v1236_v16 = vld [vmem:[%s4031_s4 + $0x8] sm:$0xff] }
 0x8cc   :  { %3165 = vmatprep.subr.msk.mxu0 %vm275_vm3, %v874_v19 }
 0x8cf   :  { %3166 = vmatpush3.xpose.msk.msra.mxu0 %vm275_vm3, %v874_v19  ;;  %v1235_v19 = vld [vmem:[%s4031_s4] sm:$0xff] }
 0x8d0   :  { %3188 = vmatprep.subr.mxu0 %v1238_v14 }
 0x8d2   :  { %3168 = vmatmul.mubr.msk.f32.vlgmr.msra.gmra.mxu0 %vm275_vm3, %v872_v20 }
 0x8d3   :  { %3189 = vmatpush3.msra.mxu0 %v1238_v14 }
 0x8d4   :  { %3190 = vmatprep.subr.mxu0 %v1237_v15 }
 0x8d5   :  { %3191 = vmatpush3.msra.mxu0 %v1237_v15 }
 0x8d6   :  { %3192 = vmatprep.subr.mxu0 %v1236_v16 }
 0x8d7   :  { %3193 = vmatpush3.msra.mxu0 %v1236_v16 }
 0x8d8   :  { %3194 = vmatprep.subr.mxu0 %v1235_v19 }
 0x8d9   :  { %3195 = vmatpush3.msra.mxu0 %v1235_v19 }
 0x98a   :  { %v3162_v21 = vpop.f32.mrf.mxu0 }
 0x98c   :  { %v860_v22 = vpop.f32.mrf.mxu0 }
 0x992   :  { %v3169_v23 = vpop.f32.mrf.mxu0 }
 0x993   :  { %v957_v24 = vadd.f32 %v3169_v23, %v3581_v49 }
 0x994   :  { %v951_v25 = vpop.f32.mrf.mxu0 }
 0x995   :  { %v952_v26 = vadd.f32 %v951_v25, %v3583_v51  ;;  %v963_v27 = vsel %vm359_vm4, %v957_v24, -inf }
 0x996   :  { %964 = vmax.xlane.f32.xlu1 %v963_v27 }
 0x997   :  { %v960_v28 = vsel %vm359_vm4, %v952_v26, -inf }
 0x998   :  { %961 = vmax.xlane.f32.xlu0 %v960_v28 }
 0x9a7   :  { %982 = vrot.lane.b32.xlu1 %v3569_v46, %s3482_s29 }
 0x9ab   :  { %1071 = vrot.lane.b32.xlu1 %v3643_v52, %s3471_s28  ;;  %v1100_v52 = vld [vmem:[%s4030_s3] sm:$0xff] }
 0x9af   :  { %1073 = vrot.lane.b32.xlu1 %v3641_v50, %s3471_s28  ;;  %v1101_v50 = vld [vmem:[%s4030_s3 + $0x8] sm:$0xff] }
 0x9b3   :  { %1081 = vrot.lane.b32.xlu1 %v3162_v21, %s3483_s30 }
 0xa1f   :  { %v965_v29 = vpop.xlane.xlu1 %964 }
 0xa20   :  { %v967_v30 = vsub.f32 %v957_v24, %v965_v29 }
 0xa21   :  { %v962_v31 = vpop.xlane.xlu0 %961 }
 0xa22   :  { %v970_v32 = vmul.f32 1.442695, %v967_v30  ;;  %v966_v33 = vsub.f32 %v952_v26, %v962_v31 }
 0xa23   :  { %v983_v41 = vpop.permute.xlu1 %982 }
 0xa24   :  { %3381 = vpow2.f32 %v970_v32  ;;  %v968_v34 = vmul.f32 1.442695, %v966_v33 }
 0xa26   :  { %3383 = vpow2.f32 %v968_v34 }
 0xa27   :  { %v1072_v55 = vpop.permute.xlu1 %1071 }
 0xa28   :  { %v1093_v59 = vsel %vm275_vm3, %v3613_v18, %v1072_v55  ;;  %v1334_v55 = vld [vmem:[%s4032_s5] sm:$0xff] }
 0xa2b   :  { %v1074_v56 = vpop.permute.xlu1 %1073 }
 0xa2c   :  { %v1094_v61 = vsel %vm275_vm3, %v3611_v17, %v1074_v56  ;;  %v2906_v56 = vld [vmem:[#allocation2 + $0x29] ss:$0 sm:$0xff] }
 0xa2f   :  { %v1082_v57 = vpop.permute.xlu1 %1081 }
 0xa30   :  { %v1096_v0 = vsel %vm359_vm4, %v1094_v61, %v1082_v57 }
 0xa31   :  { %v3382_v35 = vpop.eup %3381 }
 0xa32   :  { %v975_v46 = vsel %vm359_vm4, %v3382_v35, 0.0 }
 0xa33   :  { %v3384_v36 = vpop.eup %3383  ;;  %976 = vadd.xlane.f32.xlu0 %v975_v46  ;;  %v2904_v46 = vld [vmem:[#allocation2 + $0x27] ss:$0 sm:$0xff] }
 0xa34   :  { %v972_v37 = vsel %vm359_vm4, %v3384_v36, 0.0 }
 0xa37   :  { %973 = vadd.xlane.f32.xlu0 %v972_v37  ;;  %v2905_v37 = vld [vmem:[#allocation2 + $0x28] ss:$0 sm:$0xff] }
 0xa4d   :  { %984 = vrot.lane.b32.xlu0 %v3565_v45, %s3482_s29  ;;  %v1103_v45 = vld [vmem:[%s4030_s3 + $0x18] sm:$0xff] }
 0xa51   :  { %1079 = vrot.lane.b32.xlu0 %v860_v22, %s3483_s30 }
 0xabc   :  { %v977_v38 = vpop.xlane.xlu0 %976 }
 0xabd   :  { %3385 = vrcp.f32 %v977_v38 }
 0xac0   :  { %v974_v39 = vpop.xlane.xlu0 %973 }
 0xac1   :  { %3387 = vrcp.f32 %v974_v39 }
 0xac4   :  { %v985_v40 = vpop.permute.xlu0 %984 }
 0xac5   :  { %3170 = vmatprep.subr.mxu1 %v985_v40 }
 0xac6   :  { %3171 = vmatpush3.msra.mxu1 %v985_v40 }
 0xac7   :  { %3172 = vmatprep.subr.mxu1 %v983_v41 }
 0xac8   :  { %3173 = vmatpush3.msra.mxu1 %v983_v41  ;;  %v1080_v58 = vpop.permute.xlu0 %1079 }
 0xac9   :  { %3177 = vmatprep.subr.mxu1 %v1103_v45  ;;  %v1095_v62 = vsel %vm359_vm4, %v1093_v59, %v1080_v58 }
 0xaca   :  { %v3386_v42 = vpop.eup %3385 }
 0xacb   :  { %v981_v47 = vmul.f32 %v3386_v42, %v3382_v35 }
 0xace   :  { %v3388_v43 = vpop.eup %3387 }
 0xacf   :  { %v980_v44 = vmul.f32 %v3388_v43, %v3384_v36 }
 0xad1   :  { %3174 = vmatprep.mubr.msk.f32.mxu1 %vm359_vm4, %v980_v44 }
 0xad2   :  { %3175 = vmatmul.mubr.msk.f32.vlgmr.msra.gmra.mxu1 %vm359_vm4, %v981_v47  ;;  %v1341_v47 = vld [vmem:[%s4032_s5 + $0x38] sm:$0xff] }
 0xad3   :  { %3178 = vmatpush3.msra.mxu1 %v1103_v45  ;;  %v1340_v45 = vld [vmem:[%s4032_s5 + $0x30] sm:$0xff] }
 0xad4   :  { %3179 = vmatprep.subr.mxu1 %v1102_v48 }
 0xad5   :  { %3180 = vmatpush3.msra.mxu1 %v1102_v48  ;;  %v1339_v48 = vld [vmem:[%s4032_s5 + $0x28] sm:$0xff] }
 0xad6   :  { %3181 = vmatprep.subr.mxu1 %v1101_v50 }
 0xad7   :  { %3182 = vmatpush3.msra.mxu1 %v1101_v50  ;;  %v1338_v50 = vld [vmem:[%s4032_s5 + $0x20] sm:$0xff] }
 0xad8   :  { %3183 = vmatprep.subr.mxu1 %v1100_v52 }
 0xad9   :  { %3184 = vmatpush3.msra.mxu1 %v1100_v52  ;;  %v1337_v52 = vld [vmem:[%s4032_s5 + $0x18] sm:$0xff] }
 0xada   :  { %3199 = vmatprep.subr.mxu1 %v1341_v47 }
 0xb92   :  { %v3176_v53 = vpop.f32.mrf.mxu1 }
 0xb93   :  { %1089 = vrot.lane.b32.xlu1 %v3176_v53, %s3484_s14  ;;  %v1336_v53 = vld [vmem:[%s4032_s5 + $0x10] sm:$0xff] }
 0xb94   :  { %v1060_v54 = vpop.f32.mrf.mxu1 }
 0xb95   :  { %1087 = vrot.lane.b32.xlu0 %v1060_v54, %s3484_s14  ;;  %v1335_v54 = vld [vmem:[%s4032_s5 + $0x8] sm:$0xff] }
 0xc05   :  { %v1090_v60 = vpop.permute.xlu1 %1089 }
 0xc06   :  { %v1099_v2 = vsel %vm1097_vm5, %v1096_v0, %v1090_v60 }
 0xc07   :  { %v1088_v63 = vpop.permute.xlu0 %1087 }
 0xc08   :  { %v1098_v1 = vsel %vm1097_vm5, %v1095_v62, %v1088_v63 }
 0xc09   :  { %3185 = vmatprep.mubr.msk.f32.mxu1 %vm140_vm2, %v1098_v1 }
 0xc0a   :  { %3186 = vmatmul.mubr.msk.f32.vlgmr.msra.gmra.mxu1 %vm140_vm2, %v1099_v2 }
 0xc0b   :  { %3200 = vmatpush3.msra.mxu1 %v1341_v47  ;;  %v2913_v47 = vld [vmem:[#allocation2 + $0x2c] ss:$0 sm:$0xff] }
 0xc0c   :  { %3201 = vmatprep.subr.mxu1 %v1340_v45 }
 0xc0d   :  { %3202 = vmatpush3.msra.mxu1 %v1340_v45 }
 0xc0e   :  { %3203 = vmatprep.subr.mxu1 %v1339_v48 }
 0xc0f   :  { %3204 = vmatpush3.msra.mxu1 %v1339_v48 }
 0xc10   :  { %3205 = vmatprep.subr.mxu1 %v1338_v50 }
 0xc11   :  { %3206 = vmatpush3.msra.mxu1 %v1338_v50 }
 0xc12   :  { %3207 = vmatprep.subr.mxu1 %v1337_v52 }
 0xc13   :  { %3208 = vmatpush3.msra.mxu1 %v1337_v52 }
 0xc14   :  { %3209 = vmatprep.subr.mxu1 %v1336_v53 }
 0xc15   :  { %3210 = vmatpush3.msra.mxu1 %v1336_v53 }
 0xc16   :  { %3211 = vmatprep.subr.mxu1 %v1335_v54 }
 0xc17   :  { %3212 = vmatpush3.msra.mxu1 %v1335_v54 }
 0xc18   :  { %3213 = vmatprep.subr.mxu1 %v1334_v55 }
 0xc19   :  { %3214 = vmatpush3.msra.mxu1 %v1334_v55 }
 0xcca   :  { %v3187_v18 = vpop.f32.mrf.mxu1 }
 0xccb   :  { %v1186_v4 = vadd.f32 %v3187_v18, %v3535_v7 }
 0xccc   :  { %v1176_v5 = vpop.f32.mrf.mxu1 }
 0xccd   :  { %v3714_v6 = vadd.f32 %v2903_v3, %v1186_v4  ;;  %v1185_v17 = vadd.f32 %v1176_v5, %v3537_v8 }
 0xccf   :  { %v3717_v9 = vadd.f32 %v2903_v3, %v1185_v17  ;;  %v1196_v10 = vsel %vm140_vm2, %v3714_v6, 0.0  ;;  %v1202_v13 = vmul.f32 %v3714_v6, %v3714_v6  ;;  %v2911_v17 = vld [vmem:[#allocation2 + $0x2a] ss:$0 sm:$0xff] }
 0xcd0   :  { %1197 = vadd.xlane.f32.xlu1 %v1196_v10 }
 0xcd1   :  { %v1193_v11 = vsel %vm140_vm2, %v3717_v9, 0.0  ;;  %v1201_v12 = vmul.f32 %v3717_v9, %v3717_v9  ;;  %v1206_v8 = vsel %vm140_vm2, %v1202_v13, 0.0 }
 0xcd2   :  { %1194 = vadd.xlane.f32.xlu0 %v1193_v11 }
 0xcd3   :  { %v1203_v7 = vsel %vm140_vm2, %v1201_v12, 0.0 }
 0xcd6   :  { %1204 = vadd.xlane.f32.xlu0 %v1203_v7 }
 0xcda   :  { %1207 = vadd.xlane.f32.xlu0 %v1206_v8 }
 0xd59   :  { %v1198_v22 = vpop.xlane.xlu1 %1197 }
 0xd5a   :  { %v1200_v24 = vmul.f32 0.03125, %v1198_v22  ;;  %v2915_v22 = vld [vmem:[%s4029_s2 + $0x28] sm:$0xff] }
 0xd5b   :  { %v1195_v20 = vpop.xlane.xlu0 %1194 }
 0xd5c   :  { %v1199_v21 = vmul.f32 0.03125, %v1195_v20  ;;  %v1212_v29 = vmul.f32 %v1200_v24, %v1200_v24  ;;  %v1216_v38 = vsub.f32 %v3714_v6, %v1200_v24  ;;  %v2917_v20 = vld [vmem:[%s4029_s2 + $0x38] sm:$0xff] }
 0xd5d   :  { %3218 = vmatprep.subr.mxu0 %v2917_v20 }
 0xd5e   :  { %v1211_v25 = vmul.f32 %v1199_v21, %v1199_v21  ;;  %v1215_v34 = vsub.f32 %v3717_v9, %v1199_v21  ;;  %v2916_v21 = vld [vmem:[%s4029_s2 + $0x30] sm:$0xff] }
 0xd5f   :  { %v1205_v23 = vpop.xlane.xlu0 %1204 }
 0xd60   :  { %v1209_v26 = vmul.f32 0.03125, %v1205_v23  ;;  %v2914_v23 = vld [vmem:[%s4029_s2 + $0x20] sm:$0xff] }
 0xd62   :  { %v1213_v27 = vsub.f32 %v1209_v26, %v1211_v25 }
 0xd63   :  { %v1208_v28 = vpop.xlane.xlu0 %1207 }
 0xd64   :  { %v1217_v30 = vadd.f32 1e-05, %v1213_v27  ;;  %v1210_v31 = vmul.f32 0.03125, %v1208_v28 }
 0xd66   :  { %3389 = vrsqrt.f32 %v1217_v30  ;;  %v1214_v32 = vsub.f32 %v1210_v31, %v1212_v29 }
 0xd68   :  { %v1218_v33 = vadd.f32 1e-05, %v1214_v32 }
 0xd6a   :  { %3391 = vrsqrt.f32 %v1218_v33 }
 0xd73   :  { %v3390_v35 = vpop.eup %3389 }
 0xd74   :  { %v1221_v36 = vmul.f32 %v3390_v35, %v1215_v34 }
 0xd76   :  { %v1227_v39 = vmul.f32 %v2904_v46, %v1221_v36 }
 0xd77   :  { %v3392_v40 = vpop.eup %3391 }
 0xd78   :  { %v1222_v41 = vmul.f32 %v3392_v40, %v1216_v38  ;;  %v1233_v42 = vadd.f32 %v2905_v37, %v1227_v39  ;;  %v2912_v40 = vld [vmem:[#allocation2 + $0x2b] ss:$0 sm:$0xff] }
 0xd7a   :  { %v1228_v43 = vmul.f32 %v2904_v46, %v1222_v41  ;;  %3196 = vmatprep.mubr.msk.f32.mxu0 %vm140_vm2, %v1233_v42 }
 0xd7c   :  { %v1234_v44 = vadd.f32 %v2905_v37, %v1228_v43 }
 0xd7e   :  { %3197 = vmatmul.mubr.msk.f32.vlgmr.msra.gmra.mxu0 %vm140_vm2, %v1234_v44 }
 0xd7f   :  { %3219 = vmatpush3.msra.mxu0 %v2917_v20 }
 0xd80   :  { %3220 = vmatprep.subr.mxu0 %v2916_v21 }
 0xd81   :  { %3221 = vmatpush3.msra.mxu0 %v2916_v21 }
 0xd82   :  { %3222 = vmatprep.subr.mxu0 %v2915_v22 }
 0xd83   :  { %3223 = vmatpush3.msra.mxu0 %v2915_v22 }
 0xd84   :  { %3224 = vmatprep.subr.mxu0 %v2914_v23 }
 0xd85   :  { %3225 = vmatpush3.msra.mxu0 %v2914_v23 }
 0xe3e   :  { %v3198_v57 = vpop.f32.mrf.mxu0 }
 0xe3f   :  { %v1321_v58 = vadd.f32 %v3198_v57, %v2906_v56 }
 0xe40   :  { %v1315_v59 = vpop.f32.mrf.mxu0 }
 0xe41   :  { %v1327_v60 = vmul.f32 0.70710677, %v1321_v58  ;;  %v1316_v61 = vadd.f32 %v2906_v56, %v1315_v59  ;;  %v1325_v18 = vmul.f32 0.5, %v1321_v58 }
 0xe43   :  { %3393 = verf.f32 %v1327_v60  ;;  %v1326_v62 = vmul.f32 0.70710677, %v1316_v61  ;;  %v1324_v2 = vmul.f32 0.5, %v1316_v61 }
 0xe45   :  { %3395 = verf.f32 %v1326_v62 }
 0xe50   :  { %v3394_v63 = vpop.eup %3393 }
 0xe51   :  { %v1331_v1 = vadd.f32 1.0, %v3394_v63 }
 0xe52   :  { %v3396_v0 = vpop.eup %3395 }
 0xe53   :  { %v1330_v3 = vadd.f32 1.0, %v3396_v0  ;;  %v1333_v5 = vmul.f32 %v1331_v1, %v1325_v18 }
 0xe55   :  { %v1332_v4 = vmul.f32 %v1330_v3, %v1324_v2 }
 0xe57   :  { %3215 = vmatprep.mubr.msk.f32.mxu1 %vm1342_vm6, %v1332_v4 }
 0xe58   :  { %3216 = vmatmul.mubr.msk.f32.vlgmr.msra.gmra.mxu1 %vm1342_vm6, %v1333_v5 }
 0xf18   :  { %v3217_v10 = vpop.f32.mrf.mxu1 }
 0xf19   :  { %v1425_v11 = vadd.f32 %v3217_v10, %v3714_v6 }
 0xf1a   :  { %v1415_v12 = vpop.f32.mrf.mxu1 }
 0xf1b   :  { %v3772_v7 = vadd.f32 %v2911_v17, %v1425_v11  ;;  %v1424_v13 = vadd.f32 %v1415_v12, %v3717_v9 }
 0xf1d   :  { %v3775_v8 = vadd.f32 %v2911_v17, %v1424_v13  ;;  %v1442_v14 = vsel %vm140_vm2, %v3772_v7, 0.0  ;;  %v1448_v15 = vmul.f32 %v3772_v7, %v3772_v7 }
 0xf1e   :  { %1443 = vadd.xlane.f32.xlu1 %v1442_v14 }
 0xf1f   :  { %v1439_v16 = vsel %vm140_vm2, %v3775_v8, 0.0  ;;  %v1447_v6 = vmul.f32 %v3775_v8, %v3775_v8  ;;  %v1452_v19 = vsel %vm140_vm2, %v1448_v15, 0.0 }
 0xf20   :  { %1440 = vadd.xlane.f32.xlu0 %v1439_v16 }
 0xf21   :  { %v1449_v9 = vsel %vm140_vm2, %v1447_v6, 0.0 }
 0xf22   :  { %1453 = vadd.xlane.f32.xlu1 %v1452_v19 }
 0xf24   :  { %1450 = vadd.xlane.f32.xlu0 %v1449_v9 }
 0xfa7   :  { %v1444_v24 = vpop.xlane.xlu1 %1443 }
 0xfa8   :  { %v1446_v25 = vmul.f32 0.03125, %v1444_v24 }
 0xfa9   :  { %v1441_v26 = vpop.xlane.xlu0 %1440 }
 0xfaa   :  { %v1445_v27 = vmul.f32 0.03125, %v1441_v26  ;;  %v1458_v29 = vmul.f32 %v1446_v25, %v1446_v25  ;;  %v1462_v37 = vsub.f32 %v3772_v7, %v1446_v25 }
 0xfab   :  { %v1454_v28 = vpop.xlane.xlu1 %1453 }
 0xfac   :  { %v1456_v30 = vmul.f32 0.03125, %v1454_v28  ;;  %v1457_v32 = vmul.f32 %v1445_v27, %v1445_v27  ;;  %v1461_v39 = vsub.f32 %v3775_v8, %v1445_v27 }
 0xfad   :  { %v1451_v31 = vpop.xlane.xlu0 %1450 }
 0xfae   :  { %v1460_v33 = vsub.f32 %v1456_v30, %v1458_v29  ;;  %v1455_v34 = vmul.f32 0.03125, %v1451_v31 }
 0xfb0   :  { %v1464_v35 = vadd.f32 1e-05, %v1460_v33  ;;  %v1459_v46 = vsub.f32 %v1455_v34, %v1457_v32 }
 0xfb2   :  { %3397 = vrsqrt.f32 %v1464_v35  ;;  %v1463_v36 = vadd.f32 1e-05, %v1459_v46 }
 0xfb4   :  { %3399 = vrsqrt.f32 %v1463_v36 }
 0xfbf   :  { %v3398_v38 = vpop.eup %3397 }
 0xfc0   :  { %v1468_v41 = vmul.f32 %v3398_v38, %v1462_v37 }
 0xfc1   :  { %v3400_v42 = vpop.eup %3399 }
 0xfc2   :  { %v1467_v43 = vmul.f32 %v3400_v42, %v1461_v39  ;;  %v1474_v44 = vmul.f32 %v2912_v40, %v1468_v41 }
 0xfc4   :  { %v1473_v45 = vmul.f32 %v2912_v40, %v1467_v43  ;;  %v1480_v50 = vadd.f32 %v2913_v47, %v1474_v44 }
 0xfc6   :  { %v1479_v48 = vadd.f32 %v2913_v47, %v1473_v45 }
 0xfc8   :  { %3226 = vmatprep.mubr.msk.f32.mxu0 %vm140_vm2, %v1479_v48 }
 0xfc9   :  { %3227 = vmatmul.mubr.msk.f32.vlgmr.msra.gmra.mxu0 %vm140_vm2, %v1480_v50 }
0x1089   :  { %v3803_v52 = vpop.f32.mrf.mxu0 }
0x108a   :  { %1571 = vrot.lane.b32.xlu0 %v3803_v52, %s3472_s18 }
0x108b   :  { %v3807_v53 = vpop.f32.mrf.mxu0 }
0x108c   :  { %1569 = vrot.lane.b32.xlu1 %v3807_v53, %s3472_s18  ;;  %3233 = vmatprep.mubr.msk.f32.mxu0 %vm275_vm3, %v3807_v53 }
0x108e   :  { %1765 = vrot.lane.b32.xlu0 %v3807_v53, %s3475_s21 }
0x1090   :  { %1771 = vrot.lane.b32.xlu1 %v3803_v52, %s3474_s20 }
0x1094   :  { %1769 = vrot.lane.b32.xlu1 %v3807_v53, %s3474_s20 }
0x1098   :  { %1767 = vrot.lane.b32.xlu1 %v3803_v52, %s3475_s21 }
0x10fc   :  { %v1572_v54 = vpop.permute.xlu0 %1571 }
0x10fd   :  { %3229 = vmatprep.subr.msk.mxu0 %vm275_vm3, %v1572_v54 }
0x10fe   :  { %3230 = vmatpush3.xpose.msk.msra.mxu0 %vm275_vm3, %v1572_v54  ;;  %v1570_v55 = vpop.permute.xlu1 %1569 }
0x10ff   :  { %3231 = vmatprep.subr.msk.mxu0 %vm275_vm3, %v1570_v55 }
0x1100   :  { %v1766_v57 = vpop.permute.xlu0 %1765 }
0x1102   :  { %3232 = vmatpush3.xpose.msk.msra.mxu0 %vm275_vm3, %v1570_v55  ;;  %v1772_v56 = vpop.permute.xlu1 %1771 }
0x1103   :  { %3243 = vmatprep.subr.msk.mxu0 %vm275_vm3, %v1772_v56 }
0x1105   :  { %3234 = vmatmul.mubr.msk.f32.vlgmr.msra.gmra.mxu0 %vm275_vm3, %v3803_v52 }
0x1106   :  { %v1770_v58 = vpop.permute.xlu1 %1769  ;;  %3244 = vmatpush3.xpose.msk.msra.mxu0 %vm275_vm3, %v1772_v56  ;;  %3247 = vmatprep.mubr.msk.f32.mxu0 %vm275_vm3, %v1766_v57  ;;  %v3445_v57 = vld [vmem:[#allocation2 + $0x8] sm:$0xff] }
0x1107   :  { %3245 = vmatprep.subr.msk.mxu0 %vm275_vm3, %v1770_v58 }
0x110a   :  { %3246 = vmatpush3.xpose.msk.msra.mxu0 %vm275_vm3, %v1770_v58  ;;  %v1768_v59 = vpop.permute.xlu1 %1767 }
0x110d   :  { %3248 = vmatmul.mubr.msk.f32.vlgmr.msra.gmra.mxu0 %vm275_vm3, %v1768_v59 }
0x11c5   :  { %v3235_v60 = vpop.f32.mrf.mxu0 }
0x11c6   :  { %v1653_v61 = vadd.f32 %v3235_v60, %v3581_v49  ;;  %v3446_v60 = vld [vmem:[#allocation2] sm:$0xff] }
0x11c7   :  { %v1647_v62 = vpop.f32.mrf.mxu0 }
0x11c8   :  { %v1648_v63 = vadd.f32 %v1647_v62, %v3583_v51  ;;  %v1659_v0 = vsel %vm359_vm4, %v1653_v61, -inf }
0x11c9   :  { %1660 = vmax.xlane.f32.xlu1 %v1659_v0 }
0x11ca   :  { %v1656_v1 = vsel %vm359_vm4, %v1648_v63, -inf }
0x11cb   :  { %1657 = vmax.xlane.f32.xlu0 %v1656_v1 }
0x11cd   :  { %v3249_v2 = vpop.f32.mrf.mxu0 }
0x11ce   :  { %v1853_v4 = vadd.f32 %v3249_v2, %v3581_v49 }
0x11cf   :  { %v1847_v3 = vpop.f32.mrf.mxu0 }
0x11d0   :  { %v1848_v18 = vadd.f32 %v1847_v3, %v3583_v51  ;;  %v1859_v17 = vsel %vm359_vm4, %v1853_v4, -inf }
0x11d2   :  { %v1856_v5 = vsel %vm359_vm4, %v1848_v18, -inf }
0x11d3   :  { %1857 = vmax.xlane.f32.xlu0 %v1856_v5 }
0x11d7   :  { %1860 = vmax.xlane.f32.xlu0 %v1859_v17 }
0x11da   :  { %1678 = vrot.lane.b32.xlu1 %v3807_v53, %s3473_s19 }
0x11de   :  { %1880 = vrot.lane.b32.xlu1 %v3803_v52, %s3476_s22 }
0x11e2   :  { %1878 = vrot.lane.b32.xlu1 %v3807_v53, %s3476_s22 }
0x11ed   :  { %1680 = vrot.lane.b32.xlu0 %v3803_v52, %s3473_s19 }
0x1252   :  { %v1661_v51 = vpop.xlane.xlu1 %1660 }
0x1253   :  { %v1663_v49 = vsub.f32 %v1653_v61, %v1661_v51 }
0x1254   :  { %v1658_v10 = vpop.xlane.xlu0 %1657 }
0x1255   :  { %v1666_v11 = vmul.f32 1.442695, %v1663_v49  ;;  %v1662_v12 = vsub.f32 %v1648_v63, %v1658_v10 }
0x1256   :  { %v1679_v9 = vpop.permute.xlu1 %1678 }
0x1257   :  { %3401 = vpow2.f32 %v1666_v11  ;;  %v1664_v13 = vmul.f32 1.442695, %v1662_v12 }
0x1259   :  { %3403 = vpow2.f32 %v1664_v13 }
0x125a   :  { %v1881_v26 = vpop.permute.xlu1 %1880 }
0x125c   :  { %v1858_v14 = vpop.xlane.xlu0 %1857 }
0x125d   :  { %v1862_v15 = vsub.f32 %v1848_v18, %v1858_v14 }
0x125e   :  { %v1879_v31 = vpop.permute.xlu1 %1878 }
0x125f   :  { %v1864_v16 = vmul.f32 1.442695, %v1862_v15 }
0x1260   :  { %v1861_v6 = vpop.xlane.xlu0 %1860 }
0x1261   :  { %3405 = vpow2.f32 %v1864_v16  ;;  %v1863_v19 = vsub.f32 %v1853_v4, %v1861_v6 }
0x1263   :  { %v1866_v20 = vmul.f32 1.442695, %v1863_v19 }
0x1264   :  { %v3402_v21 = vpop.eup %3401  ;;  %v1681_v22 = vpop.permute.xlu0 %1680 }
0x1265   :  { %3407 = vpow2.f32 %v1866_v20  ;;  %3236 = vmatprep.subr.mxu1 %v1681_v22  ;;  %v1671_v23 = vsel %vm359_vm4, %v3402_v21, 0.0 }
0x1266   :  { %v3404_v24 = vpop.eup %3403  ;;  %1672 = vadd.xlane.f32.xlu1 %v1671_v23  ;;  %3237 = vmatpush3.msra.mxu1 %v1681_v22 }
0x1267   :  { %3238 = vmatprep.subr.mxu1 %v1679_v9  ;;  %v1668_v25 = vsel %vm359_vm4, %v3404_v24, 0.0 }
0x1268   :  { %1669 = vadd.xlane.f32.xlu0 %v1668_v25  ;;  %3239 = vmatpush3.msra.mxu1 %v1679_v9 }
0x1269   :  { %3250 = vmatprep.subr.mxu1 %v1881_v26 }
0x126e   :  { %v3406_v27 = vpop.eup %3405 }
0x126f   :  { %v1868_v28 = vsel %vm359_vm4, %v3406_v27, 0.0 }
0x1270   :  { %1869 = vadd.xlane.f32.xlu0 %v1868_v28 }
0x1272   :  { %v3408_v29 = vpop.eup %3407 }
0x1273   :  { %v1871_v30 = vsel %vm359_vm4, %v3408_v29, 0.0 }
0x1274   :  { %1872 = vadd.xlane.f32.xlu1 %v1871_v30 }
0x1285   :  { %1969 = vrot.lane.b32.xlu1 %v3807_v53, %s3477_s23 }
0x1286   :  { %1971 = vrot.lane.b32.xlu0 %v3803_v52, %s3477_s23 }
0x1289   :  { %1967 = vrot.lane.b32.xlu1 %v3803_v52, %s3478_s24 }
0x128a   :  { %1965 = vrot.lane.b32.xlu0 %v3807_v53, %s3478_s24 }
0x12ef   :  { %v1673_v32 = vpop.xlane.xlu1 %1672 }
0x12f0   :  { %3409 = vrcp.f32 %v1673_v32 }
0x12f1   :  { %v1670_v33 = vpop.xlane.xlu0 %1669 }
0x12f2   :  { %3411 = vrcp.f32 %v1670_v33 }
0x12f9   :  { %v1870_v34 = vpop.xlane.xlu0 %1869 }
0x12fa   :  { %3413 = vrcp.f32 %v1870_v34 }
0x12fd   :  { %v1873_v35 = vpop.xlane.xlu1 %1872  ;;  %v3410_v46 = vpop.eup %3409 }
0x12fe   :  { %3415 = vrcp.f32 %v1873_v35  ;;  %v1677_v38 = vmul.f32 %v3410_v46, %v3402_v21  ;;  %v1972_v39 = vpop.permute.xlu0 %1971 }
0x12ff   :  { %v3412_v36 = vpop.eup %3411 }
0x1300   :  { %v1676_v37 = vmul.f32 %v3412_v36, %v3404_v24 }
0x1301   :  { %v1970_v47 = vpop.permute.xlu1 %1969 }
0x1302   :  { %3240 = vmatprep.mubr.msk.f32.mxu1 %vm359_vm4, %v1676_v37  ;;  %v1966_v44 = vpop.permute.xlu0 %1965 }
0x1303   :  { %3241 = vmatmul.mubr.msk.f32.vlgmr.msra.gmra.mxu1 %vm359_vm4, %v1677_v38 }
0x1304   :  { %3251 = vmatpush3.msra.mxu1 %v1881_v26 }
0x1305   :  { %3252 = vmatprep.subr.mxu1 %v1879_v31  ;;  %v1968_v45 = vpop.permute.xlu1 %1967 }
0x1306   :  { %3253 = vmatpush3.msra.mxu1 %v1879_v31 }
0x1307   :  { %v3414_v40 = vpop.eup %3413  ;;  %3257 = vmatprep.subr.msk.mxu1 %vm275_vm3, %v1972_v39 }
0x1308   :  { %v1876_v41 = vmul.f32 %v3414_v40, %v3406_v27 }
0x130a   :  { %3254 = vmatprep.mubr.msk.f32.mxu1 %vm359_vm4, %v1876_v41 }
0x130b   :  { %v3416_v42 = vpop.eup %3415 }
0x130c   :  { %v1877_v43 = vmul.f32 %v3416_v42, %v3408_v29 }
0x130e   :  { %3255 = vmatmul.mubr.msk.f32.vlgmr.msra.gmra.mxu1 %vm359_vm4, %v1877_v43 }
0x130f   :  { %3258 = vmatpush3.xpose.msk.msra.mxu1 %vm275_vm3, %v1972_v39  ;;  %3261 = vmatprep.mubr.msk.f32.mxu1 %vm275_vm3, %v1966_v44 }
0x1310   :  { %3259 = vmatprep.subr.msk.mxu1 %vm275_vm3, %v1970_v47 }
0x1313   :  { %3260 = vmatpush3.xpose.msk.msra.mxu1 %vm275_vm3, %v1970_v47 }
0x1316   :  { %3262 = vmatmul.mubr.msk.f32.vlgmr.msra.gmra.mxu1 %vm275_vm3, %v1968_v45  ;;  %v2946_v45 = vld [vmem:[%s4030_s3 + $0x30] sm:$0xff] }
0x13c3   :  { %v3871_v48 = vpop.f32.mrf.mxu1 }
0x13c5   :  { %v3873_v50 = vpop.f32.mrf.mxu1 }
0x13ce   :  { %v3875_v54 = vpop.f32.mrf.mxu1 }
0x13d0   :  { %v3877_v55 = vpop.f32.mrf.mxu1 }
0x13d6   :  { %v3263_v56 = vpop.f32.mrf.mxu1 }
0x13d7   :  { %v2053_v58 = vadd.f32 %v3445_v57, %v3263_v56 }
0x13d8   :  { %v2047_v59 = vpop.f32.mrf.mxu1 }
0x13d9   :  { %v2048_v61 = vadd.f32 %v3446_v60, %v2047_v59  ;;  %v2059_v62 = vsel %vm359_vm4, %v2053_v58, -inf }
0x13da   :  { %2060 = vmax.xlane.f32.xlu1 %v2059_v62 }
0x13db   :  { %v2056_v63 = vsel %vm359_vm4, %v2048_v61, -inf }
0x13dc   :  { %2057 = vmax.xlane.f32.xlu0 %v2056_v63 }
0x13eb   :  { %2078 = vrot.lane.b32.xlu1 %v3807_v53, %s3479_s25 }
0x13ef   :  { %2171 = vrot.lane.b32.xlu1 %v3803_v52, %s3480_s26 }
0x13f3   :  { %2169 = vrot.lane.b32.xlu1 %v3807_v53, %s3480_s26 }
0x13f7   :  { %2167 = vrot.lane.b32.xlu1 %v3803_v52, %s3481_s27 }
0x1463   :  { %v2061_v0 = vpop.xlane.xlu1 %2060 }
0x1464   :  { %v2063_v1 = vsub.f32 %v2053_v58, %v2061_v0 }
0x1465   :  { %v2058_v2 = vpop.xlane.xlu0 %2057 }
0x1466   :  { %v2066_v3 = vmul.f32 1.442695, %v2063_v1  ;;  %v2062_v18 = vsub.f32 %v2048_v61, %v2058_v2 }
0x1467   :  { %v2079_v12 = vpop.permute.xlu1 %2078 }
0x1468   :  { %3417 = vpow2.f32 %v2066_v3  ;;  %v2064_v4 = vmul.f32 1.442695, %v2062_v18 }
0x146a   :  { %3419 = vpow2.f32 %v2064_v4 }
0x146b   :  { %v2172_v14 = vpop.permute.xlu1 %2171 }
0x146f   :  { %v2170_v20 = vpop.permute.xlu1 %2169 }
0x1473   :  { %v2168_v21 = vpop.permute.xlu1 %2167 }
0x1475   :  { %v3418_v5 = vpop.eup %3417 }
0x1476   :  { %v2071_v17 = vsel %vm359_vm4, %v3418_v5, 0.0 }
0x1477   :  { %v3420_v51 = vpop.eup %3419  ;;  %2072 = vadd.xlane.f32.xlu0 %v2071_v17 }
0x1478   :  { %v2068_v49 = vsel %vm359_vm4, %v3420_v51, 0.0 }
0x147b   :  { %2069 = vadd.xlane.f32.xlu0 %v2068_v49 }
0x1491   :  { %2080 = vrot.lane.b32.xlu0 %v3803_v52, %s3479_s25 }
0x1495   :  { %2165 = vrot.lane.b32.xlu0 %v3807_v53, %s3481_s27 }
0x1500   :  { %v2073_v10 = vpop.xlane.xlu0 %2072 }
0x1501   :  { %3421 = vrcp.f32 %v2073_v10 }
0x1504   :  { %v2070_v11 = vpop.xlane.xlu0 %2069 }
0x1505   :  { %3423 = vrcp.f32 %v2070_v11 }
0x1508   :  { %v2081_v13 = vpop.permute.xlu0 %2080 }
0x1509   :  { %3264 = vmatprep.subr.mxu0 %v2081_v13 }
0x150a   :  { %3265 = vmatpush3.msra.mxu0 %v2081_v13 }
0x150b   :  { %3266 = vmatprep.subr.mxu0 %v2079_v12 }
0x150c   :  { %3267 = vmatpush3.msra.mxu0 %v2079_v12  ;;  %v2166_v9 = vpop.permute.xlu0 %2165 }
0x150d   :  { %3271 = vmatprep.subr.msk.mxu0 %vm275_vm3, %v2172_v14 }
0x150e   :  { %v3422_v15 = vpop.eup %3421 }
0x150f   :  { %v2077_v19 = vmul.f32 %v3422_v15, %v3418_v5  ;;  %v2950_v5 = vld [vmem:[#allocation2 + $0x2d] ss:$0 sm:$0xff]  ;;  %v2956_v15 = vld [vmem:[%s4031_s4 + $0x38] sm:$0xff] }
0x1512   :  { %v3424_v16 = vpop.eup %3423 }
0x1513   :  { %v2076_v6 = vmul.f32 %v3424_v16, %v3420_v51  ;;  %v2955_v16 = vld [vmem:[%s4031_s4 + $0x30] sm:$0xff] }
0x1515   :  { %3268 = vmatprep.mubr.msk.f32.mxu0 %vm359_vm4, %v2076_v6  ;;  %v2954_v6 = vld [vmem:[%s4031_s4 + $0x28] sm:$0xff] }
0x1516   :  { %3269 = vmatmul.mubr.msk.f32.vlgmr.msra.gmra.mxu0 %vm359_vm4, %v2077_v19  ;;  %v2953_v19 = vld [vmem:[%s4031_s4 + $0x20] sm:$0xff] }
0x1517   :  { %3272 = vmatpush3.xpose.msk.msra.mxu0 %vm275_vm3, %v2172_v14  ;;  %3275 = vmatprep.mubr.msk.f32.mxu0 %vm275_vm3, %v2166_v9 }
0x1518   :  { %3273 = vmatprep.subr.msk.mxu0 %vm275_vm3, %v2170_v20 }
0x151b   :  { %3274 = vmatpush3.xpose.msk.msra.mxu0 %vm275_vm3, %v2170_v20 }
0x151c   :  { %3296 = vmatprep.subr.mxu0 %v2956_v15 }
0x151e   :  { %3276 = vmatmul.mubr.msk.f32.vlgmr.msra.gmra.mxu0 %vm275_vm3, %v2168_v21 }
0x151f   :  { %3297 = vmatpush3.msra.mxu0 %v2956_v15 }
0x1520   :  { %3298 = vmatprep.subr.mxu0 %v2955_v16 }
0x1521   :  { %3299 = vmatpush3.msra.mxu0 %v2955_v16 }
0x1522   :  { %3300 = vmatprep.subr.mxu0 %v2954_v6 }
0x1523   :  { %3301 = vmatpush3.msra.mxu0 %v2954_v6 }
0x1524   :  { %3302 = vmatprep.subr.mxu0 %v2953_v19 }
0x1525   :  { %3303 = vmatpush3.msra.mxu0 %v2953_v19 }
0x15d6   :  { %v3270_v22 = vpop.f32.mrf.mxu0 }
0x15d8   :  { %v2156_v23 = vpop.f32.mrf.mxu0 }
0x15de   :  { %v3277_v24 = vpop.f32.mrf.mxu0 }
0x15df   :  { %v2253_v25 = vadd.f32 %v3445_v57, %v3277_v24 }
0x15e0   :  { %v2247_v26 = vpop.f32.mrf.mxu0 }
0x15e1   :  { %v2248_v27 = vadd.f32 %v3446_v60, %v2247_v26  ;;  %v2259_v28 = vsel %vm359_vm4, %v2253_v25, -inf }
0x15e2   :  { %2260 = vmax.xlane.f32.xlu1 %v2259_v28 }
0x15e3   :  { %v2256_v29 = vsel %vm359_vm4, %v2248_v27, -inf }
0x15e4   :  { %2257 = vmax.xlane.f32.xlu0 %v2256_v29 }
0x15f3   :  { %2278 = vrot.lane.b32.xlu1 %v3807_v53, %s3482_s29 }
0x15f7   :  { %2367 = vrot.lane.b32.xlu1 %v3877_v55, %s3471_s28  ;;  %v2944_v55 = vld [vmem:[%s4030_s3 + $0x20] sm:$0xff] }
0x15fb   :  { %2369 = vrot.lane.b32.xlu1 %v3875_v54, %s3471_s28  ;;  %v2945_v54 = vld [vmem:[%s4030_s3 + $0x28] sm:$0xff] }
0x15ff   :  { %2377 = vrot.lane.b32.xlu1 %v3270_v22, %s3483_s30 }
0x166b   :  { %v2261_v30 = vpop.xlane.xlu1 %2260 }
0x166c   :  { %v2263_v31 = vsub.f32 %v2253_v25, %v2261_v30 }
0x166d   :  { %v2258_v32 = vpop.xlane.xlu0 %2257 }
0x166e   :  { %v2266_v33 = vmul.f32 1.442695, %v2263_v31  ;;  %v2262_v34 = vsub.f32 %v2248_v27, %v2258_v32 }
0x166f   :  { %v2279_v41 = vpop.permute.xlu1 %2278 }
0x1670   :  { %3425 = vpow2.f32 %v2266_v33  ;;  %v2264_v35 = vmul.f32 1.442695, %v2262_v34 }
0x1672   :  { %3427 = vpow2.f32 %v2264_v35  ;;  %v2951_v35 = vld [vmem:[#allocation2 + $0x2e] ss:$0 sm:$0xff] }
0x1673   :  { %v2368_v58 = vpop.permute.xlu1 %2367 }
0x1674   :  { %v2389_v62 = vsel %vm275_vm3, %v3873_v50, %v2368_v58 }
0x1677   :  { %v2370_v59 = vpop.permute.xlu1 %2369 }
0x1678   :  { %v2390_v0 = vsel %vm275_vm3, %v3871_v48, %v2370_v59 }
0x167b   :  { %v2378_v60 = vpop.permute.xlu1 %2377 }
0x167c   :  { %v2392_v3 = vsel %vm359_vm4, %v2390_v0, %v2378_v60 }
0x167d   :  { %v3426_v46 = vpop.eup %3425 }
0x167e   :  { %v2271_v36 = vsel %vm359_vm4, %v3426_v46, 0.0 }
0x167f   :  { %v3428_v53 = vpop.eup %3427  ;;  %2272 = vadd.xlane.f32.xlu0 %v2271_v36  ;;  %v2952_v36 = vld [vmem:[#allocation2 + $0x2f] ss:$0 sm:$0xff] }
0x1680   :  { %v2268_v37 = vsel %vm359_vm4, %v3428_v53, 0.0 }
0x1683   :  { %2269 = vadd.xlane.f32.xlu0 %v2268_v37 }
0x1699   :  { %2280 = vrot.lane.b32.xlu0 %v3803_v52, %s3482_s29  ;;  %v2947_v52 = vld [vmem:[%s4030_s3 + $0x38] sm:$0xff] }
0x169d   :  { %2375 = vrot.lane.b32.xlu0 %v2156_v23, %s3483_s30 }
0x1708   :  { %v2273_v38 = vpop.xlane.xlu0 %2272 }
0x1709   :  { %3429 = vrcp.f32 %v2273_v38 }
0x170c   :  { %v2270_v39 = vpop.xlane.xlu0 %2269 }
0x170d   :  { %3431 = vrcp.f32 %v2270_v39 }
0x1710   :  { %v2281_v40 = vpop.permute.xlu0 %2280 }
0x1711   :  { %3278 = vmatprep.subr.mxu1 %v2281_v40 }
0x1712   :  { %3279 = vmatpush3.msra.mxu1 %v2281_v40 }
0x1713   :  { %3280 = vmatprep.subr.mxu1 %v2279_v41 }
0x1714   :  { %3281 = vmatpush3.msra.mxu1 %v2279_v41  ;;  %v2376_v61 = vpop.permute.xlu0 %2375 }
0x1715   :  { %3285 = vmatprep.subr.mxu1 %v2947_v52  ;;  %v2391_v1 = vsel %vm359_vm4, %v2389_v62, %v2376_v61 }
0x1716   :  { %v3430_v42 = vpop.eup %3429 }
0x1717   :  { %v2277_v47 = vmul.f32 %v3430_v42, %v3426_v46 }
0x171a   :  { %v3432_v43 = vpop.eup %3431 }
0x171b   :  { %v2276_v44 = vmul.f32 %v3432_v43, %v3428_v53  ;;  %v2967_v43 = vld [vmem:[%s4032_s5 + $0x78] sm:$0xff] }
0x171d   :  { %3282 = vmatprep.mubr.msk.f32.mxu1 %vm359_vm4, %v2276_v44  ;;  %v2966_v44 = vld [vmem:[%s4032_s5 + $0x70] sm:$0xff] }
0x171e   :  { %3283 = vmatmul.mubr.msk.f32.vlgmr.msra.gmra.mxu1 %vm359_vm4, %v2277_v47  ;;  %v2965_v47 = vld [vmem:[%s4032_s5 + $0x68] sm:$0xff] }
0x171f   :  { %3286 = vmatpush3.msra.mxu1 %v2947_v52  ;;  %v2964_v52 = vld [vmem:[%s4032_s5 + $0x60] sm:$0xff] }
0x1720   :  { %3287 = vmatprep.subr.mxu1 %v2946_v45 }
0x1721   :  { %3288 = vmatpush3.msra.mxu1 %v2946_v45  ;;  %v2963_v45 = vld [vmem:[%s4032_s5 + $0x58] sm:$0xff] }
0x1722   :  { %3289 = vmatprep.subr.mxu1 %v2945_v54 }
0x1723   :  { %3290 = vmatpush3.msra.mxu1 %v2945_v54  ;;  %v2962_v54 = vld [vmem:[%s4032_s5 + $0x50] sm:$0xff] }
0x1724   :  { %3291 = vmatprep.subr.mxu1 %v2944_v55 }
0x1725   :  { %3292 = vmatpush3.msra.mxu1 %v2944_v55  ;;  %v2961_v55 = vld [vmem:[%s4032_s5 + $0x48] sm:$0xff] }
0x1726   :  { %3307 = vmatprep.subr.mxu1 %v2967_v43 }
0x17de   :  { %v3284_v56 = vpop.f32.mrf.mxu1 }
0x17df   :  { %2385 = vrot.lane.b32.xlu1 %v3284_v56, %s3484_s14  ;;  %v2960_v56 = vld [vmem:[%s4032_s5 + $0x40] sm:$0xff] }
0x17e0   :  { %v2356_v57 = vpop.f32.mrf.mxu1 }
0x17e1   :  { %2383 = vrot.lane.b32.xlu0 %v2356_v57, %s3484_s14  ;;  %v2957_v57 = vld [vmem:[#allocation2 + $0x30] ss:$0 sm:$0xff] }
0x1851   :  { %v2386_v63 = vpop.permute.xlu1 %2385 }
0x1852   :  { %v2394_v4 = vsel %vm1097_vm5, %v2392_v3, %v2386_v63 }
0x1853   :  { %v2384_v2 = vpop.permute.xlu0 %2383 }
0x1854   :  { %v2393_v18 = vsel %vm1097_vm5, %v2391_v1, %v2384_v2 }
0x1855   :  { %3293 = vmatprep.mubr.msk.f32.mxu1 %vm140_vm2, %v2393_v18 }
0x1856   :  { %3294 = vmatmul.mubr.msk.f32.vlgmr.msra.gmra.mxu1 %vm140_vm2, %v2394_v4 }
0x1857   :  { %3308 = vmatpush3.msra.mxu1 %v2967_v43 }
0x1858   :  { %3309 = vmatprep.subr.mxu1 %v2966_v44 }
0x1859   :  { %3310 = vmatpush3.msra.mxu1 %v2966_v44 }
0x185a   :  { %3311 = vmatprep.subr.mxu1 %v2965_v47 }
0x185b   :  { %3312 = vmatpush3.msra.mxu1 %v2965_v47  ;;  %v2973_v47 = vld [vmem:[#allocation2 + $0x34] ss:$0 sm:$0xff] }
0x185c   :  { %3313 = vmatprep.subr.mxu1 %v2964_v52 }
0x185d   :  { %3314 = vmatpush3.msra.mxu1 %v2964_v52 }
0x185e   :  { %3315 = vmatprep.subr.mxu1 %v2963_v45 }
0x185f   :  { %3316 = vmatpush3.msra.mxu1 %v2963_v45 }
0x1860   :  { %3317 = vmatprep.subr.mxu1 %v2962_v54 }
0x1861   :  { %3318 = vmatpush3.msra.mxu1 %v2962_v54 }
0x1862   :  { %3319 = vmatprep.subr.mxu1 %v2961_v55 }
0x1863   :  { %3320 = vmatpush3.msra.mxu1 %v2961_v55 }
0x1864   :  { %3321 = vmatprep.subr.mxu1 %v2960_v56 }
0x1865   :  { %3322 = vmatpush3.msra.mxu1 %v2960_v56 }
0x1916   :  { %v3295_v17 = vpop.f32.mrf.mxu1 }
0x1917   :  { %v2482_v50 = vadd.f32 %v3295_v17, %v3772_v7 }
0x1918   :  { %v2472_v51 = vpop.f32.mrf.mxu1 }
0x1919   :  { %v3944_v49 = vadd.f32 %v2950_v5, %v2482_v50  ;;  %v2481_v48 = vadd.f32 %v2472_v51, %v3775_v8  ;;  %v2970_v50 = vld [vmem:[#allocation2 + $0x31] ss:$0 sm:$0xff] }
0x191b   :  { %v3947_v10 = vadd.f32 %v2950_v5, %v2481_v48  ;;  %v2492_v11 = vsel %vm140_vm2, %v3944_v49, 0.0  ;;  %v2498_v14 = vmul.f32 %v3944_v49, %v3944_v49 }
0x191c   :  { %2493 = vadd.xlane.f32.xlu1 %v2492_v11 }
0x191d   :  { %v2489_v12 = vsel %vm140_vm2, %v3947_v10, 0.0  ;;  %v2497_v13 = vmul.f32 %v3947_v10, %v3947_v10  ;;  %v2502_v8 = vsel %vm140_vm2, %v2498_v14, 0.0 }
0x191e   :  { %2490 = vadd.xlane.f32.xlu0 %v2489_v12 }
0x191f   :  { %v2499_v7 = vsel %vm140_vm2, %v2497_v13, 0.0 }
0x1922   :  { %2500 = vadd.xlane.f32.xlu0 %v2499_v7 }
0x1926   :  { %2503 = vadd.xlane.f32.xlu0 %v2502_v8 }
0x19a5   :  { %v2494_v21 = vpop.xlane.xlu1 %2493 }
0x19a6   :  { %v2496_v23 = vmul.f32 0.03125, %v2494_v21 }
0x19a7   :  { %v2491_v9 = vpop.xlane.xlu0 %2490 }
0x19a8   :  { %v2495_v20 = vmul.f32 0.03125, %v2491_v9  ;;  %v2508_v28 = vmul.f32 %v2496_v23, %v2496_v23  ;;  %v2512_v53 = vsub.f32 %v3944_v49, %v2496_v23  ;;  %v2774_v9 = vld [vmem:[%s4033_s6 + $0x8] sm:$0xff] }
0x19aa   :  { %v2507_v24 = vmul.f32 %v2495_v20, %v2495_v20  ;;  %v2511_v33 = vsub.f32 %v3947_v10, %v2495_v20  ;;  %v2773_v20 = vld [vmem:[%s4033_s6] sm:$0xff] }
0x19ab   :  { %v2501_v22 = vpop.xlane.xlu0 %2500 }
0x19ac   :  { %v2505_v25 = vmul.f32 0.03125, %v2501_v22 }
0x19ae   :  { %v2509_v26 = vsub.f32 %v2505_v25, %v2507_v24 }
0x19af   :  { %v2504_v27 = vpop.xlane.xlu0 %2503 }
0x19b0   :  { %v2513_v29 = vadd.f32 1e-05, %v2509_v26  ;;  %v2506_v30 = vmul.f32 0.03125, %v2504_v27 }
0x19b2   :  { %3433 = vrsqrt.f32 %v2513_v29  ;;  %v2510_v31 = vsub.f32 %v2506_v30, %v2508_v28 }
0x19b4   :  { %v2514_v32 = vadd.f32 1e-05, %v2510_v31 }
0x19b6   :  { %3435 = vrsqrt.f32 %v2514_v32 }
0x19bf   :  { %v3434_v34 = vpop.eup %3433 }
0x19c0   :  { %v2517_v46 = vmul.f32 %v3434_v34, %v2511_v33 }
0x19c2   :  { %v2523_v37 = vmul.f32 %v2951_v35, %v2517_v46 }
0x19c3   :  { %v3436_v38 = vpop.eup %3435 }
0x19c4   :  { %v2518_v39 = vmul.f32 %v3436_v38, %v2512_v53  ;;  %v2529_v40 = vadd.f32 %v2952_v36, %v2523_v37  ;;  %v2971_v53 = vld [vmem:[#allocation2 + $0x32] ss:$0 sm:$0xff] }
0x19c6   :  { %v2524_v41 = vmul.f32 %v2951_v35, %v2518_v39  ;;  %3304 = vmatprep.mubr.msk.f32.mxu0 %vm140_vm2, %v2529_v40 }
0x19c8   :  { %v2530_v42 = vadd.f32 %v2952_v36, %v2524_v41  ;;  %v2972_v41 = vld [vmem:[#allocation2 + $0x33] ss:$0 sm:$0xff] }
0x19ca   :  { %3305 = vmatmul.mubr.msk.f32.vlgmr.msra.gmra.mxu0 %vm140_vm2, %v2530_v42 }
0x1a8a   :  { %v3306_v58 = vpop.f32.mrf.mxu0 }
0x1a8b   :  { %v2618_v59 = vadd.f32 %v3306_v58, %v2957_v57 }
0x1a8c   :  { %v2612_v60 = vpop.f32.mrf.mxu0 }
0x1a8d   :  { %v2624_v61 = vmul.f32 0.70710677, %v2618_v59  ;;  %v2613_v62 = vadd.f32 %v2957_v57, %v2612_v60  ;;  %v2622_v4 = vmul.f32 0.5, %v2618_v59 }
0x1a8f   :  { %3437 = verf.f32 %v2624_v61  ;;  %v2623_v63 = vmul.f32 0.70710677, %v2613_v62  ;;  %v2621_v3 = vmul.f32 0.5, %v2613_v62 }
0x1a91   :  { %3439 = verf.f32 %v2623_v63 }
0x1a9c   :  { %v3438_v0 = vpop.eup %3437 }
0x1a9d   :  { %v2628_v2 = vadd.f32 1.0, %v3438_v0 }
0x1a9e   :  { %v3440_v1 = vpop.eup %3439 }
0x1a9f   :  { %v2627_v18 = vadd.f32 1.0, %v3440_v1  ;;  %v2630_v17 = vmul.f32 %v2628_v2, %v2622_v4 }
0x1aa1   :  { %v2629_v5 = vmul.f32 %v2627_v18, %v2621_v3 }
0x1aa3   :  { %3323 = vmatprep.mubr.msk.f32.mxu1 %vm1342_vm6, %v2629_v5 }
0x1aa4   :  { %3324 = vmatmul.mubr.msk.f32.vlgmr.msra.gmra.mxu1 %vm1342_vm6, %v2630_v17 }
0x1b64   :  { %v3325_v51 = vpop.f32.mrf.mxu1 }
0x1b65   :  { %v2722_v48 = vadd.f32 %v3325_v51, %v3944_v49  ;;  %v2776_v49 = vld [vmem:[%s4033_s6 + $0x18] sm:$0xff] }
0x1b66   :  { %v2712_v11 = vpop.f32.mrf.mxu1  ;;  %3326 = vmatprep.subr.mxu0 %v2776_v49 }
0x1b67   :  { %v2728_v12 = vadd.f32 %v2970_v50, %v2722_v48  ;;  %v2721_v13 = vadd.f32 %v2712_v11, %v3947_v10  ;;  %v2775_v10 = vld [vmem:[%s4033_s6 + $0x10] sm:$0xff]  ;;  %3327 = vmatpush3.msra.mxu0 %v2776_v49 }
0x1b68   :  { %3328 = vmatprep.subr.mxu0 %v2775_v10 }
0x1b69   :  { %v2727_v7 = vadd.f32 %v2970_v50, %v2721_v13  ;;  %v2734_v14 = vsel %vm140_vm2, %v2728_v12, 0.0  ;;  %v2740_v8 = vmul.f32 %v2728_v12, %v2728_v12  ;;  %3329 = vmatpush3.msra.mxu0 %v2775_v10 }
0x1b6a   :  { %2735 = vadd.xlane.f32.xlu1 %v2734_v14  ;;  %3330 = vmatprep.subr.mxu0 %v2774_v9 }
0x1b6b   :  { %v2731_v15 = vsel %vm140_vm2, %v2727_v7, 0.0  ;;  %v2739_v16 = vmul.f32 %v2727_v7, %v2727_v7  ;;  %v2744_v6 = vsel %vm140_vm2, %v2740_v8, 0.0  ;;  %3331 = vmatpush3.msra.mxu0 %v2774_v9 }
0x1b6c   :  { %2732 = vadd.xlane.f32.xlu0 %v2731_v15  ;;  %3332 = vmatprep.subr.mxu0 %v2773_v20 }
0x1b6d   :  { %v2741_v19 = vsel %vm140_vm2, %v2739_v16, 0.0  ;;  %3333 = vmatpush3.msra.mxu0 %v2773_v20 }
0x1b6e   :  { %2745 = vadd.xlane.f32.xlu1 %v2744_v6 }
0x1b70   :  { %2742 = vadd.xlane.f32.xlu0 %v2741_v19 }
0x1bf3   :  { %v2736_v21 = vpop.xlane.xlu1 %2735 }
0x1bf4   :  { %v2738_v22 = vmul.f32 0.03125, %v2736_v21 }
0x1bf5   :  { %v2733_v23 = vpop.xlane.xlu0 %2732 }
0x1bf6   :  { %v2737_v24 = vmul.f32 0.03125, %v2733_v23  ;;  %v2750_v26 = vmul.f32 %v2738_v22, %v2738_v22  ;;  %v2754_v35 = vsub.f32 %v2728_v12, %v2738_v22 }
0x1bf7   :  { %v2746_v25 = vpop.xlane.xlu1 %2745 }
0x1bf8   :  { %v2748_v27 = vmul.f32 0.03125, %v2746_v25  ;;  %v2749_v29 = vmul.f32 %v2737_v24, %v2737_v24  ;;  %v2753_v36 = vsub.f32 %v2727_v7, %v2737_v24 }
0x1bf9   :  { %v2743_v28 = vpop.xlane.xlu0 %2742 }
0x1bfa   :  { %v2752_v30 = vsub.f32 %v2748_v27, %v2750_v26  ;;  %v2747_v31 = vmul.f32 0.03125, %v2743_v28 }
0x1bfc   :  { %v2756_v32 = vadd.f32 1e-05, %v2752_v30  ;;  %v2751_v33 = vsub.f32 %v2747_v31, %v2749_v29 }
0x1bfe   :  { %3441 = vrsqrt.f32 %v2756_v32  ;;  %v2755_v34 = vadd.f32 1e-05, %v2751_v33 }
0x1c00   :  { %3443 = vrsqrt.f32 %v2755_v34 }
0x1c0b   :  { %v3442_v46 = vpop.eup %3441 }
0x1c0c   :  { %v2760_v37 = vmul.f32 %v3442_v46, %v2754_v35 }
0x1c0d   :  { %v3444_v38 = vpop.eup %3443 }
0x1c0e   :  { %v2759_v39 = vmul.f32 %v3444_v38, %v2753_v36  ;;  %v2766_v40 = vmul.f32 %v2971_v53, %v2760_v37 }
0x1c10   :  { %v2765_v42 = vmul.f32 %v2971_v53, %v2759_v39  ;;  %v2772_v44 = vadd.f32 %v2972_v41, %v2766_v40 }
0x1c12   :  { %v2771_v43 = vadd.f32 %v2972_v41, %v2765_v42 }
0x1c14   :  { %3334 = vmatprep.mubr.msk.f32.mxu0 %vm140_vm2, %v2771_v43 }
0x1c15   :  { %3335 = vmatmul.mubr.msk.f32.vlgmr.msra.gmra.mxu0 %vm140_vm2, %v2772_v44 }
0x1cd5   :  { %v3336_v52 = vpop.f32.mrf.mxu0 }
0x1cd6   :  { %v2860_v45 = vadd.f32 %v3336_v52, %v2973_v47 }
0x1cd7   :  { %v2854_v54 = vpop.f32.mrf.mxu0 }
0x1cd8   :  { %2864 = vst [vmem:[%s4034_s7 + $0x8] sm:$0xff] %v2860_v45  ;;  %v2855_v55 = vadd.f32 %v2973_v47, %v2854_v54 }
0x1cda   :  { %2863 = vst [vmem:[%s4034_s7] sm:$0xff] %v2855_v55 }
0x1cdb   :  { %2869 = vsyncpa [#allocation3], 1 }

</bundles_post_ra>
